<compile_context>
chip_gen: v5e
topology: v5e:2x2
jax: 0.10.0
libtpu: 0.0.40
codegen_flags: <defaults>
</compile_context>

<pallas_src>
import math
import functools

import jax
import jax.numpy as jnp
from jax.experimental import pallas as pl
from jax.experimental.pallas import tpu as pltpu

D_MODEL = 32
NHEAD = 4
DIM_FF = 64
EPS = 1e-5


def _layer_norm(x, gamma, beta):
    mu = jnp.mean(x, axis=-1, keepdims=True)
    var = jnp.mean((x - mu) ** 2, axis=-1, keepdims=True)
    return (x - mu) * jax.lax.rsqrt(var + EPS) * gamma + beta


def encoder_layer_kernel(q_ref, k_ref, v_ref,
                         wqkv_ref, bqkv_ref, wo_ref,
                         w1_ref, w2_ref, b1_ref, vec_ref,
                         out_ref, *, nhead):
    f32 = jnp.float32
    bf16 = jnp.bfloat16

    q = q_ref[...].astype(f32)            # (Bt, L, E)
    k = k_ref[...].astype(f32)            # (Bt, S, E)
    v = v_ref[...].astype(f32)            # (Bt, S, E)
    bt = q.shape[0]

    # Replicate activations across heads along the leading (group) axis:
    # group g = h * bt + b.  Leading-dim concat only — no lane shuffles.
    qg = jnp.concatenate([q.astype(bf16)] * nhead, axis=0)    # (G, L, E)
    kg = jnp.concatenate([k.astype(bf16)] * nhead, axis=0)    # (G, S, E)
    vg = jnp.concatenate([v.astype(bf16)] * nhead, axis=0)    # (G, S, E)

    wq, wk, wv = wqkv_ref[0], wqkv_ref[1], wqkv_ref[2]        # (G, E, hd) bf16
    bq, bk, bv = bqkv_ref[0], bqkv_ref[1], bqkv_ref[2]        # (G, 1, hd) f32

    # In-projections, batched over all (head, batch) groups.  wq / bq already
    # carry the 1/sqrt(head_dim) scaling (folded in on the host).
    Qg = jnp.einsum('gle,ged->gld', qg, wq, preferred_element_type=f32) + bq
    Kg = jnp.einsum('gse,ged->gsd', kg, wk, preferred_element_type=f32) + bk
    Vg = jnp.einsum('gse,ged->gsd', vg, wv, preferred_element_type=f32) + bv

    # Scaled dot-product attention (no mask), batched over groups.
    s = jnp.einsum('gld,gsd->gls', Qg.astype(bf16), Kg.astype(bf16),
                   preferred_element_type=f32)                # (G, L, S)
    s = s - jnp.max(s, axis=-1, keepdims=True)
    p = jnp.exp(s)
    p = p * pl.reciprocal(jnp.sum(p, axis=-1, keepdims=True), approx=True)
    ctx = jnp.einsum('gls,gsd->gld', p.astype(bf16), Vg.astype(bf16),
                     preferred_element_type=f32)              # (G, L, hd)

    # Out-projection: per-head contribution, summed over heads (replaces the
    # head concatenate + full (E,E) matmul; mathematically identical).
    attn_g = jnp.einsum('gld,gde->gle', ctx.astype(bf16), wo_ref[...],
                        preferred_element_type=f32)           # (G, L, E)
    attn = attn_g[0:bt]
    for h in range(1, nhead):                                 # static, tiny
        attn = attn + attn_g[h * bt:(h + 1) * bt]             # (Bt, L, E)

    vec = vec_ref[...]                                        # (6, E) f32
    g1, be1, g2, be2, bo, b2 = (vec[0:1], vec[1:2], vec[2:3],
                                vec[3:4], vec[4:5], vec[5:6])

    # --- residual + norm1 (dropout1 = identity in eval mode) -----------------
    x = q + attn + bo
    x = _layer_norm(x, g1, be1)

    # --- feed-forward (relu), pre-transposed bf16 weights ---------------------
    h1 = jnp.einsum('ble,bef->blf', x.astype(bf16), w1_ref[...],
                    preferred_element_type=f32) + b1_ref[...]
    h1 = jnp.maximum(h1, 0.0)
    ff = jnp.einsum('blf,bfe->ble', h1.astype(bf16), w2_ref[...],
                    preferred_element_type=f32) + b2

    # --- residual + norm2 (dropout2 = identity) -------------------------------
    out_ref[...] = _layer_norm(x + ff, g2, be2).astype(out_ref.dtype)


def _prepare_params(params, *, nhead, bt):
    """Host-side weight plumbing: pre-transpose, split per head, fold the
    1/sqrt(hd) q-scale, broadcast over the per-step (head, batch) group dim,
    and cast matmul operands to bf16 (biases / norm params stay f32)."""
    wqkv = params["wqkv"].astype(jnp.float32)      # (3E, E) torch (out, in)
    bqkv = params["bqkv"][0].astype(jnp.float32)   # (3E,)
    E = wqkv.shape[1]
    hd = E // nhead
    G = nhead * bt
    scale = 1.0 / math.sqrt(hd)

    def head_split(w, b, scl):
        # w (E, E) with output features head-major → (G, E, hd) / (G, 1, hd)
        wh = jnp.transpose(w.reshape(nhead, hd, E), (0, 2, 1)) * scl
        bh = b.reshape(nhead, 1, hd) * scl
        wg = jnp.broadcast_to(wh[:, None], (nhead, bt, E, hd)).reshape(G, E, hd)
        bg = jnp.broadcast_to(bh[:, None], (nhead, bt, 1, hd)).reshape(G, 1, hd)
        return wg, bg

    wqg, bqg = head_split(wqkv[:E], bqkv[:E], scale)
    wkg, bkg = head_split(wqkv[E:2 * E], bqkv[E:2 * E], 1.0)
    wvg, bvg = head_split(wqkv[2 * E:], bqkv[2 * E:], 1.0)
    wqkv_g = jnp.stack([wqg, wkg, wvg]).astype(jnp.bfloat16)     # (3, G, E, hd)
    bqkv_g = jnp.stack([bqg, bkg, bvg]).astype(jnp.float32)      # (3, G, 1, hd)

    wo = params["wo"].astype(jnp.float32)                        # (E, E)
    wo_h = wo.T.reshape(nhead, hd, E)                            # (nhead, hd, E)
    wo_g = jnp.broadcast_to(wo_h[:, None],
                            (nhead, bt, hd, E)).reshape(G, hd, E)
    wo_g = wo_g.astype(jnp.bfloat16)                             # (G, hd, E)

    F_ = params["w1"].shape[0]
    w1_b = jnp.broadcast_to(params["w1"].T[None], (bt, E, F_)).astype(jnp.bfloat16)
    w2_b = jnp.broadcast_to(params["w2"].T[None], (bt, F_, E)).astype(jnp.bfloat16)
    b1 = params["b1"].astype(jnp.float32)                        # (1, F)

    vec = jnp.concatenate([params["g1"], params["be1"], params["g2"],
                           params["be2"], params["bo"], params["b2"]],
                          axis=0).astype(jnp.float32)            # (6, E)
    return wqkv_g, bqkv_g, wo_g, w1_b, w2_b, b1, vec


def general_transformer_encoder_layer(query, key, value, params, *,
                                       nhead=NHEAD, block_batch=None):
    """query: (L, N, E), key/value: (S, N, E) — PyTorch (seq, batch, embed)."""
    L, N, E = query.shape
    S = key.shape[0]
    F_ = params["w1"].shape[0]
    hd = E // nhead

    # Batch-tile size: pack as many sequences per grid step as fill ~256 rows
    # (MXU M dim) while dividing N.  The working set stays far below VMEM
    # limits even on v7x (64 MiB) at these sizes.
    if block_batch is None:
        bt = max(1, min(N, 256 // max(L, 1)))
        while N % bt:
            bt -= 1
    else:
        bt = block_batch
    G = nhead * bt

    # Batch-major layout for the kernel; at production sizes fold these
    # transposes into the surrounding graph (pure layout plumbing).
    qb = jnp.transpose(query, (1, 0, 2))   # (N, L, E)
    kb = jnp.transpose(key, (1, 0, 2))     # (N, S, E)
    vb = jnp.transpose(value, (1, 0, 2))   # (N, S, E)

    wqkv_g, bqkv_g, wo_g, w1_b, w2_b, b1, vec = _prepare_params(
        params, nhead=nhead, bt=bt)

    def const(shape):
        return pl.BlockSpec(shape, lambda b, _n=len(shape): (0,) * _n)

    out = pl.pallas_call(
        functools.partial(encoder_layer_kernel, nhead=nhead),
        out_shape=jax.ShapeDtypeStruct((N, L, E), query.dtype),
        grid=(N // bt,),
        in_specs=[
            pl.BlockSpec((bt, L, E), lambda b: (b, 0, 0)),
            pl.BlockSpec((bt, S, E), lambda b: (b, 0, 0)),
            pl.BlockSpec((bt, S, E), lambda b: (b, 0, 0)),
            const((3, G, E, hd)),      # per-head, pre-transposed QKV weights
            const((3, G, 1, hd)),      # per-head QKV biases (q pre-scaled)
            const((G, hd, E)),         # per-head out-projection weights
            const((bt, E, F_)),        # linear1 weight (pre-transposed)
            const((bt, F_, E)),        # linear2 weight (pre-transposed)
            const((1, F_)),            # linear1 bias
            const((6, E)),             # [g1, be1, g2, be2, bo, b2]
        ],
        out_specs=pl.BlockSpec((bt, L, E), lambda b: (b, 0, 0)),
        compiler_params=pltpu.CompilerParams(
            dimension_semantics=("parallel",)),
    )(qb, kb, vb, wqkv_g, bqkv_g, wo_g, w1_b, w2_b, b1, vec)

    return jnp.transpose(out, (1, 0, 2))   # back to (L, N, E)


def _reference(query, key, value, params, nhead=NHEAD):
    """Pure-JAX f32 reference mirroring torch semantics (eval mode)."""
    L, N, E = query.shape
    S = key.shape[0]
    hd = E // nhead
    wqkv, bqkv = params["wqkv"], params["bqkv"][0]
    wo, bo = params["wo"], params["bo"][0]

    q = jnp.transpose(query, (1, 0, 2))
    k = jnp.transpose(key, (1, 0, 2))
    v = jnp.transpose(value, (1, 0, 2))
    Qp = q @ wqkv[:E].T + bqkv[:E]
    Kp = k @ wqkv[E:2 * E].T + bqkv[E:2 * E]
    Vp = v @ wqkv[2 * E:].T + bqkv[2 * E:]
    Qh = Qp.reshape(N, L, nhead, hd).transpose(0, 2, 1, 3) / math.sqrt(hd)
    Kh = Kp.reshape(N, S, nhead, hd).transpose(0, 2, 1, 3)
    Vh = Vp.reshape(N, S, nhead, hd).transpose(0, 2, 1, 3)
    s = jnp.einsum("nhld,nhsd->nhls", Qh, Kh)
    p = jax.nn.softmax(s, axis=-1)
    ctx = jnp.einsum("nhls,nhsd->nhld", p, Vh).transpose(0, 2, 1, 3).reshape(N, L, E)
    attn = ctx @ wo.T + bo
    x = q + attn
    x = _layer_norm(x, params["g1"][0], params["be1"][0])
    ff = jnp.maximum(x @ params["w1"].T + params["b1"][0], 0.0) @ params["w2"].T + params["b2"][0]
    y = _layer_norm(x + ff, params["g2"][0], params["be2"][0])
    return jnp.transpose(y, (1, 0, 2))


def make_params(key, d_model=D_MODEL, dim_ff=DIM_FF):
    ks = jax.random.split(key, 10)
    return {
        "wqkv": 0.05 * jax.random.normal(ks[0], (3 * d_model, d_model), jnp.float32),
        "bqkv": 0.05 * jax.random.normal(ks[1], (1, 3 * d_model), jnp.float32),
        "wo":   0.05 * jax.random.normal(ks[2], (d_model, d_model), jnp.float32),
        "bo":   0.05 * jax.random.normal(ks[3], (1, d_model), jnp.float32),
        "w1":   0.05 * jax.random.normal(ks[4], (dim_ff, d_model), jnp.float32),
        "b1":   0.05 * jax.random.normal(ks[5], (1, dim_ff), jnp.float32),
        "w2":   0.05 * jax.random.normal(ks[6], (d_model, dim_ff), jnp.float32),
        "b2":   0.05 * jax.random.normal(ks[7], (1, d_model), jnp.float32),
        "g1":   1.0 + 0.02 * jax.random.normal(ks[8], (1, d_model), jnp.float32),
        "be1":  0.02 * jax.random.normal(ks[9], (1, d_model), jnp.float32),
        "g2":   1.0 - 0.02 * jax.random.normal(ks[8], (1, d_model), jnp.float32),
        "be2": -0.02 * jax.random.normal(ks[9], (1, d_model), jnp.float32),
    }


if __name__ == "__main__":
    key = jax.random.PRNGKey(0)
    k_q, k_k, k_v, k_p = jax.random.split(key, 4)

    L, S, N, E = 8, 8, 2, D_MODEL          # (seq_q, seq_kv, batch, d_model)
    query = jax.random.normal(k_q, (L, N, E), jnp.float32)
    key_t = jax.random.normal(k_k, (S, N, E), jnp.float32)
    value = jax.random.normal(k_v, (S, N, E), jnp.float32)
    params = make_params(k_p)

    out = general_transformer_encoder_layer(query, key_t, value, params)
    out = jax.block_until_ready(out)

    ref = _reference(query, key_t, value, params)
    assert out.shape == (L, N, E)
    max_err = float(jnp.max(jnp.abs(out - ref)))
    # bf16 matmul operands + approx reciprocal vs a pure-f32 reference.
    assert jnp.allclose(out, ref, atol=1e-2, rtol=1e-2), f"mismatch (max err {max_err})"

    print("KERNEL_OK")
</pallas_src>

<mosaic_0001>
module attributes {stable_mosaic.version = 11 : i64} {
  func.func @encoder_layer_kernel(%arg0: i32, %arg1: memref<2x8x32xf32, #tpu.memory_space<vmem>>, %arg2: memref<2x8x32xf32, #tpu.memory_space<vmem>>, %arg3: memref<2x8x32xf32, #tpu.memory_space<vmem>>, %arg4: memref<3x8x32x8xbf16, #tpu.memory_space<vmem>>, %arg5: memref<3x8x1x8xf32, #tpu.memory_space<vmem>>, %arg6: memref<8x8x32xbf16, #tpu.memory_space<vmem>>, %arg7: memref<2x32x64xbf16, #tpu.memory_space<vmem>>, %arg8: memref<2x64x32xbf16, #tpu.memory_space<vmem>>, %arg9: memref<1x64xf32, #tpu.memory_space<vmem>>, %arg10: memref<6x32xf32, #tpu.memory_space<vmem>>, %arg11: memref<2x8x32xf32, #tpu.memory_space<vmem>>) attributes {dimension_semantics = [#tpu.dimension_semantics<parallel>], iteration_bounds = array<i64: 1>, scalar_prefetch = 0 : i64, scratch_operands = 0 : i64, tpu.core_type = #tpu.core_type<tc>, window_params = [{transform_indices = @transform_0, window_bounds = array<i64: 2, 8, 32>}, {transform_indices = @transform_1, window_bounds = array<i64: 2, 8, 32>}, {transform_indices = @transform_2, window_bounds = array<i64: 2, 8, 32>}, {pipeline_mode = #tpu.pipeline_mode<synchronous>, transform_indices = @transform_3, window_bounds = array<i64: 3, 8, 32, 8>}, {pipeline_mode = #tpu.pipeline_mode<synchronous>, transform_indices = @transform_4, window_bounds = array<i64: 3, 8, 1, 8>}, {pipeline_mode = #tpu.pipeline_mode<synchronous>, transform_indices = @transform_5, window_bounds = array<i64: 8, 8, 32>}, {pipeline_mode = #tpu.pipeline_mode<synchronous>, transform_indices = @transform_6, window_bounds = array<i64: 2, 32, 64>}, {pipeline_mode = #tpu.pipeline_mode<synchronous>, transform_indices = @transform_7, window_bounds = array<i64: 2, 64, 32>}, {pipeline_mode = #tpu.pipeline_mode<synchronous>, transform_indices = @transform_8, window_bounds = array<i64: 1, 64>}, {pipeline_mode = #tpu.pipeline_mode<synchronous>, transform_indices = @transform_9, window_bounds = array<i64: 6, 32>}, {transform_indices = @transform_10, window_bounds = array<i64: 2, 8, 32>}]} {
    %c0 = arith.constant 0 : index
    %c0_0 = arith.constant 0 : index
    %c0_1 = arith.constant 0 : index
    %0 = vector.load %arg1[%c0, %c0_0, %c0_1] : memref<2x8x32xf32, #tpu.memory_space<vmem>>, vector<2x8x32xf32>
    %c0_2 = arith.constant 0 : index
    %c0_3 = arith.constant 0 : index
    %c0_4 = arith.constant 0 : index
    %1 = vector.load %arg2[%c0_2, %c0_3, %c0_4] : memref<2x8x32xf32, #tpu.memory_space<vmem>>, vector<2x8x32xf32>
    %c0_5 = arith.constant 0 : index
    %c0_6 = arith.constant 0 : index
    %c0_7 = arith.constant 0 : index
    %2 = vector.load %arg3[%c0_5, %c0_6, %c0_7] : memref<2x8x32xf32, #tpu.memory_space<vmem>>, vector<2x8x32xf32>
    %3 = arith.truncf %0 : vector<2x8x32xf32> to vector<2x8x32xbf16>
    %4 = tpu.concatenate %3, %3, %3, %3 in 0 : vector<2x8x32xbf16>, vector<2x8x32xbf16>, vector<2x8x32xbf16>, vector<2x8x32xbf16> -> vector<8x8x32xbf16>
    %5 = arith.truncf %1 : vector<2x8x32xf32> to vector<2x8x32xbf16>
    %6 = tpu.concatenate %5, %5, %5, %5 in 0 : vector<2x8x32xbf16>, vector<2x8x32xbf16>, vector<2x8x32xbf16>, vector<2x8x32xbf16> -> vector<8x8x32xbf16>
    %7 = arith.truncf %2 : vector<2x8x32xf32> to vector<2x8x32xbf16>
    %8 = tpu.concatenate %7, %7, %7, %7 in 0 : vector<2x8x32xbf16>, vector<2x8x32xbf16>, vector<2x8x32xbf16>, vector<2x8x32xbf16> -> vector<8x8x32xbf16>
    %c0_8 = arith.constant 0 : index
    %c0_9 = arith.constant 0 : index
    %c0_10 = arith.constant 0 : index
    %c0_11 = arith.constant 0 : index
    %9 = vector.load %arg4[%c0_8, %c0_9, %c0_10, %c0_11] : memref<3x8x32x8xbf16, #tpu.memory_space<vmem>>, vector<1x8x32x8xbf16>
    %10 = vector.shape_cast %9 : vector<1x8x32x8xbf16> to vector<8x32x8xbf16>
    %c1 = arith.constant 1 : index
    %c0_12 = arith.constant 0 : index
    %c0_13 = arith.constant 0 : index
    %c0_14 = arith.constant 0 : index
    %11 = vector.load %arg4[%c1, %c0_12, %c0_13, %c0_14] : memref<3x8x32x8xbf16, #tpu.memory_space<vmem>>, vector<1x8x32x8xbf16>
    %12 = vector.shape_cast %11 : vector<1x8x32x8xbf16> to vector<8x32x8xbf16>
    %c2 = arith.constant 2 : index
    %c0_15 = arith.constant 0 : index
    %c0_16 = arith.constant 0 : index
    %c0_17 = arith.constant 0 : index
    %13 = vector.load %arg4[%c2, %c0_15, %c0_16, %c0_17] : memref<3x8x32x8xbf16, #tpu.memory_space<vmem>>, vector<1x8x32x8xbf16>
    %14 = vector.shape_cast %13 : vector<1x8x32x8xbf16> to vector<8x32x8xbf16>
    %c0_18 = arith.constant 0 : index
    %c0_19 = arith.constant 0 : index
    %c0_20 = arith.constant 0 : index
    %c0_21 = arith.constant 0 : index
    %15 = vector.load %arg5[%c0_18, %c0_19, %c0_20, %c0_21] : memref<3x8x1x8xf32, #tpu.memory_space<vmem>>, vector<1x8x1x8xf32>
    %16 = vector.shape_cast %15 : vector<1x8x1x8xf32> to vector<8x1x8xf32>
    %c1_22 = arith.constant 1 : index
    %c0_23 = arith.constant 0 : index
    %c0_24 = arith.constant 0 : index
    %c0_25 = arith.constant 0 : index
    %17 = vector.load %arg5[%c1_22, %c0_23, %c0_24, %c0_25] : memref<3x8x1x8xf32, #tpu.memory_space<vmem>>, vector<1x8x1x8xf32>
    %18 = vector.shape_cast %17 : vector<1x8x1x8xf32> to vector<8x1x8xf32>
    %c2_26 = arith.constant 2 : index
    %c0_27 = arith.constant 0 : index
    %c0_28 = arith.constant 0 : index
    %c0_29 = arith.constant 0 : index
    %19 = vector.load %arg5[%c2_26, %c0_27, %c0_28, %c0_29] : memref<3x8x1x8xf32, #tpu.memory_space<vmem>>, vector<1x8x1x8xf32>
    %20 = vector.shape_cast %19 : vector<1x8x1x8xf32> to vector<8x1x8xf32>
    "tpu.trace_start"() <{level = 10 : i32, message = "gle,ged->gld"}> : () -> ()
    %cst = arith.constant dense<0.000000e+00> : vector<8x8x8xf32>
    %21 = tpu.matmul %4, %10, %cst {dimension_numbers = #tpu.dot_dimension_numbers<[2], [1], [1], [2], [0, 0, 0, 1, 1, 2], [0], [0]>} : vector<8x8x32xbf16>, vector<8x32x8xbf16>, vector<8x8x8xf32> -> vector<8x8x8xf32>
    "tpu.trace_stop"() : () -> ()
    %22 = vector.broadcast %16 : vector<8x1x8xf32> to vector<8x8x8xf32>
    %23 = arith.addf %21, %22 : vector<8x8x8xf32>
    "tpu.trace_start"() <{level = 10 : i32, message = "gse,ged->gsd"}> : () -> ()
    %cst_30 = arith.constant dense<0.000000e+00> : vector<8x8x8xf32>
    %24 = tpu.matmul %6, %12, %cst_30 {dimension_numbers = #tpu.dot_dimension_numbers<[2], [1], [1], [2], [0, 0, 0, 1, 1, 2], [0], [0]>} : vector<8x8x32xbf16>, vector<8x32x8xbf16>, vector<8x8x8xf32> -> vector<8x8x8xf32>
    "tpu.trace_stop"() : () -> ()
    %25 = vector.broadcast %18 : vector<8x1x8xf32> to vector<8x8x8xf32>
    %26 = arith.addf %24, %25 : vector<8x8x8xf32>
    "tpu.trace_start"() <{level = 10 : i32, message = "gse,ged->gsd"}> : () -> ()
    %cst_31 = arith.constant dense<0.000000e+00> : vector<8x8x8xf32>
    %27 = tpu.matmul %8, %14, %cst_31 {dimension_numbers = #tpu.dot_dimension_numbers<[2], [1], [1], [2], [0, 0, 0, 1, 1, 2], [0], [0]>} : vector<8x8x32xbf16>, vector<8x32x8xbf16>, vector<8x8x8xf32> -> vector<8x8x8xf32>
    "tpu.trace_stop"() : () -> ()
    %28 = vector.broadcast %20 : vector<8x1x8xf32> to vector<8x8x8xf32>
    %29 = arith.addf %27, %28 : vector<8x8x8xf32>
    %30 = arith.truncf %23 : vector<8x8x8xf32> to vector<8x8x8xbf16>
    %31 = arith.truncf %26 : vector<8x8x8xf32> to vector<8x8x8xbf16>
    "tpu.trace_start"() <{level = 10 : i32, message = "gld,gsd->gls"}> : () -> ()
    %cst_32 = arith.constant dense<0.000000e+00> : vector<8x8x8xf32>
    %32 = tpu.matmul %30, %31, %cst_32 {dimension_numbers = #tpu.dot_dimension_numbers<[2], [2], [1], [1], [0, 0, 0, 1, 1, 1], [0], [0]>} : vector<8x8x8xbf16>, vector<8x8x8xbf16>, vector<8x8x8xf32> -> vector<8x8x8xf32>
    "tpu.trace_stop"() : () -> ()
    %cst_33 = arith.constant dense<0xFF800000> : vector<8x8xf32>
    %33 = vector.multi_reduction <maximumf>, %32, %cst_33 [2] : vector<8x8x8xf32> to vector<8x8xf32>
    %34 = vector.shape_cast %33 : vector<8x8xf32> to vector<8x8x1xf32>
    %35 = vector.broadcast %34 : vector<8x8x1xf32> to vector<8x8x8xf32>
    %36 = arith.subf %32, %35 : vector<8x8x8xf32>
    %37 = math.exp %36 : vector<8x8x8xf32>
    %cst_34 = arith.constant dense<0.000000e+00> : vector<8x8xf32>
    %38 = vector.multi_reduction <add>, %37, %cst_34 [2] : vector<8x8x8xf32> to vector<8x8xf32>
    %39 = vector.shape_cast %38 : vector<8x8xf32> to vector<8x8x1xf32>
    %40 = tpu.reciprocal %39 {approx = true} : vector<8x8x1xf32> -> vector<8x8x1xf32>
    %41 = vector.broadcast %40 : vector<8x8x1xf32> to vector<8x8x8xf32>
    %42 = arith.mulf %37, %41 : vector<8x8x8xf32>
    %43 = arith.truncf %42 : vector<8x8x8xf32> to vector<8x8x8xbf16>
    %44 = arith.truncf %29 : vector<8x8x8xf32> to vector<8x8x8xbf16>
    "tpu.trace_start"() <{level = 10 : i32, message = "gls,gsd->gld"}> : () -> ()
    %cst_35 = arith.constant dense<0.000000e+00> : vector<8x8x8xf32>
    %45 = tpu.matmul %43, %44, %cst_35 {dimension_numbers = #tpu.dot_dimension_numbers<[2], [1], [1], [2], [0, 0, 0, 1, 1, 2], [0], [0]>} : vector<8x8x8xbf16>, vector<8x8x8xbf16>, vector<8x8x8xf32> -> vector<8x8x8xf32>
    "tpu.trace_stop"() : () -> ()
    %46 = arith.truncf %45 : vector<8x8x8xf32> to vector<8x8x8xbf16>
    %c0_36 = arith.constant 0 : index
    %c0_37 = arith.constant 0 : index
    %c0_38 = arith.constant 0 : index
    %47 = vector.load %arg6[%c0_36, %c0_37, %c0_38] : memref<8x8x32xbf16, #tpu.memory_space<vmem>>, vector<8x8x32xbf16>
    "tpu.trace_start"() <{level = 10 : i32, message = "gld,gde->gle"}> : () -> ()
    %cst_39 = arith.constant dense<0.000000e+00> : vector<8x8x32xf32>
    %48 = tpu.matmul %46, %47, %cst_39 {dimension_numbers = #tpu.dot_dimension_numbers<[2], [1], [1], [2], [0, 0, 0, 1, 1, 2], [0], [0]>} : vector<8x8x8xbf16>, vector<8x8x32xbf16>, vector<8x8x32xf32> -> vector<8x8x32xf32>
    "tpu.trace_stop"() : () -> ()
    %49 = vector.extract_strided_slice %48 {offsets = [0, 0, 0], sizes = [2, 8, 32], strides = [1, 1, 1]} : vector<8x8x32xf32> to vector<2x8x32xf32>
    %50 = vector.extract_strided_slice %48 {offsets = [2, 0, 0], sizes = [2, 8, 32], strides = [1, 1, 1]} : vector<8x8x32xf32> to vector<2x8x32xf32>
    %51 = arith.addf %49, %50 : vector<2x8x32xf32>
    %52 = vector.extract_strided_slice %48 {offsets = [4, 0, 0], sizes = [2, 8, 32], strides = [1, 1, 1]} : vector<8x8x32xf32> to vector<2x8x32xf32>
    %53 = arith.addf %51, %52 : vector<2x8x32xf32>
    %54 = vector.extract_strided_slice %48 {offsets = [6, 0, 0], sizes = [2, 8, 32], strides = [1, 1, 1]} : vector<8x8x32xf32> to vector<2x8x32xf32>
    %55 = arith.addf %53, %54 : vector<2x8x32xf32>
    %c0_40 = arith.constant 0 : index
    %c0_41 = arith.constant 0 : index
    %56 = vector.load %arg10[%c0_40, %c0_41] : memref<6x32xf32, #tpu.memory_space<vmem>>, vector<6x32xf32>
    %57 = vector.extract_strided_slice %56 {offsets = [0, 0], sizes = [1, 32], strides = [1, 1]} : vector<6x32xf32> to vector<1x32xf32>
    %58 = vector.extract_strided_slice %56 {offsets = [1, 0], sizes = [1, 32], strides = [1, 1]} : vector<6x32xf32> to vector<1x32xf32>
    %59 = vector.extract_strided_slice %56 {offsets = [2, 0], sizes = [1, 32], strides = [1, 1]} : vector<6x32xf32> to vector<1x32xf32>
    %60 = vector.extract_strided_slice %56 {offsets = [3, 0], sizes = [1, 32], strides = [1, 1]} : vector<6x32xf32> to vector<1x32xf32>
    %61 = vector.extract_strided_slice %56 {offsets = [4, 0], sizes = [1, 32], strides = [1, 1]} : vector<6x32xf32> to vector<1x32xf32>
    %62 = vector.extract_strided_slice %56 {offsets = [5, 0], sizes = [1, 32], strides = [1, 1]} : vector<6x32xf32> to vector<1x32xf32>
    %63 = arith.addf %0, %55 : vector<2x8x32xf32>
    %64 = vector.shape_cast %61 : vector<1x32xf32> to vector<1x1x32xf32>
    %65 = vector.broadcast %64 : vector<1x1x32xf32> to vector<2x8x32xf32>
    %66 = arith.addf %63, %65 : vector<2x8x32xf32>
    %cst_42 = arith.constant dense<0.000000e+00> : vector<2x8xf32>
    %67 = vector.multi_reduction <add>, %66, %cst_42 [2] : vector<2x8x32xf32> to vector<2x8xf32>
    %68 = vector.shape_cast %67 : vector<2x8xf32> to vector<2x8x1xf32>
    %cst_43 = arith.constant 3.200000e+01 : f32
    %69 = vector.broadcast %cst_43 : f32 to vector<2x8x1xf32>
    %70 = arith.divf %68, %69 : vector<2x8x1xf32>
    %71 = vector.broadcast %70 : vector<2x8x1xf32> to vector<2x8x32xf32>
    %72 = arith.subf %66, %71 : vector<2x8x32xf32>
    %73 = arith.mulf %72, %72 : vector<2x8x32xf32>
    %cst_44 = arith.constant dense<0.000000e+00> : vector<2x8xf32>
    %74 = vector.multi_reduction <add>, %73, %cst_44 [2] : vector<2x8x32xf32> to vector<2x8xf32>
    %75 = vector.shape_cast %74 : vector<2x8xf32> to vector<2x8x1xf32>
    %cst_45 = arith.constant 3.200000e+01 : f32
    %76 = vector.broadcast %cst_45 : f32 to vector<2x8x1xf32>
    %77 = arith.divf %75, %76 : vector<2x8x1xf32>
    %78 = vector.broadcast %70 : vector<2x8x1xf32> to vector<2x8x32xf32>
    %79 = arith.subf %66, %78 : vector<2x8x32xf32>
    %cst_46 = arith.constant 9.99999974E-6 : f32
    %80 = vector.broadcast %cst_46 : f32 to vector<2x8x1xf32>
    %81 = arith.addf %77, %80 : vector<2x8x1xf32>
    %82 = math.rsqrt %81 : vector<2x8x1xf32>
    %83 = vector.broadcast %82 : vector<2x8x1xf32> to vector<2x8x32xf32>
    %84 = arith.mulf %79, %83 : vector<2x8x32xf32>
    %85 = vector.shape_cast %57 : vector<1x32xf32> to vector<1x1x32xf32>
    %86 = vector.broadcast %85 : vector<1x1x32xf32> to vector<2x8x32xf32>
    %87 = arith.mulf %84, %86 : vector<2x8x32xf32>
    %88 = vector.shape_cast %58 : vector<1x32xf32> to vector<1x1x32xf32>
    %89 = vector.broadcast %88 : vector<1x1x32xf32> to vector<2x8x32xf32>
    %90 = arith.addf %87, %89 : vector<2x8x32xf32>
    %91 = arith.truncf %90 : vector<2x8x32xf32> to vector<2x8x32xbf16>
    %c0_47 = arith.constant 0 : index
    %c0_48 = arith.constant 0 : index
    %c0_49 = arith.constant 0 : index
    %92 = vector.load %arg7[%c0_47, %c0_48, %c0_49] : memref<2x32x64xbf16, #tpu.memory_space<vmem>>, vector<2x32x64xbf16>
    "tpu.trace_start"() <{level = 10 : i32, message = "ble,bef->blf"}> : () -> ()
    %cst_50 = arith.constant dense<0.000000e+00> : vector<2x8x64xf32>
    %93 = tpu.matmul %91, %92, %cst_50 {dimension_numbers = #tpu.dot_dimension_numbers<[2], [1], [1], [2], [0, 0, 0, 1, 1, 2], [0], [0]>} : vector<2x8x32xbf16>, vector<2x32x64xbf16>, vector<2x8x64xf32> -> vector<2x8x64xf32>
    "tpu.trace_stop"() : () -> ()
    %c0_51 = arith.constant 0 : index
    %c0_52 = arith.constant 0 : index
    %94 = vector.load %arg9[%c0_51, %c0_52] : memref<1x64xf32, #tpu.memory_space<vmem>>, vector<1x64xf32>
    %95 = vector.shape_cast %94 : vector<1x64xf32> to vector<1x1x64xf32>
    %96 = vector.broadcast %95 : vector<1x1x64xf32> to vector<2x8x64xf32>
    %97 = arith.addf %93, %96 : vector<2x8x64xf32>
    %cst_53 = arith.constant 0.000000e+00 : f32
    %98 = vector.broadcast %cst_53 : f32 to vector<2x8x64xf32>
    %99 = arith.maximumf %97, %98 : vector<2x8x64xf32>
    %100 = arith.truncf %99 : vector<2x8x64xf32> to vector<2x8x64xbf16>
    %c0_54 = arith.constant 0 : index
    %c0_55 = arith.constant 0 : index
    %c0_56 = arith.constant 0 : index
    %101 = vector.load %arg8[%c0_54, %c0_55, %c0_56] : memref<2x64x32xbf16, #tpu.memory_space<vmem>>, vector<2x64x32xbf16>
    "tpu.trace_start"() <{level = 10 : i32, message = "blf,bfe->ble"}> : () -> ()
    %cst_57 = arith.constant dense<0.000000e+00> : vector<2x8x32xf32>
    %102 = tpu.matmul %100, %101, %cst_57 {dimension_numbers = #tpu.dot_dimension_numbers<[2], [1], [1], [2], [0, 0, 0, 1, 1, 2], [0], [0]>} : vector<2x8x64xbf16>, vector<2x64x32xbf16>, vector<2x8x32xf32> -> vector<2x8x32xf32>
    "tpu.trace_stop"() : () -> ()
    %103 = vector.shape_cast %62 : vector<1x32xf32> to vector<1x1x32xf32>
    %104 = vector.broadcast %103 : vector<1x1x32xf32> to vector<2x8x32xf32>
    %105 = arith.addf %102, %104 : vector<2x8x32xf32>
    %106 = arith.addf %90, %105 : vector<2x8x32xf32>
    %cst_58 = arith.constant dense<0.000000e+00> : vector<2x8xf32>
    %107 = vector.multi_reduction <add>, %106, %cst_58 [2] : vector<2x8x32xf32> to vector<2x8xf32>
    %108 = vector.shape_cast %107 : vector<2x8xf32> to vector<2x8x1xf32>
    %cst_59 = arith.constant 3.200000e+01 : f32
    %109 = vector.broadcast %cst_59 : f32 to vector<2x8x1xf32>
    %110 = arith.divf %108, %109 : vector<2x8x1xf32>
    %111 = vector.broadcast %110 : vector<2x8x1xf32> to vector<2x8x32xf32>
    %112 = arith.subf %106, %111 : vector<2x8x32xf32>
    %113 = arith.mulf %112, %112 : vector<2x8x32xf32>
    %cst_60 = arith.constant dense<0.000000e+00> : vector<2x8xf32>
    %114 = vector.multi_reduction <add>, %113, %cst_60 [2] : vector<2x8x32xf32> to vector<2x8xf32>
    %115 = vector.shape_cast %114 : vector<2x8xf32> to vector<2x8x1xf32>
    %cst_61 = arith.constant 3.200000e+01 : f32
    %116 = vector.broadcast %cst_61 : f32 to vector<2x8x1xf32>
    %117 = arith.divf %115, %116 : vector<2x8x1xf32>
    %118 = vector.broadcast %110 : vector<2x8x1xf32> to vector<2x8x32xf32>
    %119 = arith.subf %106, %118 : vector<2x8x32xf32>
    %cst_62 = arith.constant 9.99999974E-6 : f32
    %120 = vector.broadcast %cst_62 : f32 to vector<2x8x1xf32>
    %121 = arith.addf %117, %120 : vector<2x8x1xf32>
    %122 = math.rsqrt %121 : vector<2x8x1xf32>
    %123 = vector.broadcast %122 : vector<2x8x1xf32> to vector<2x8x32xf32>
    %124 = arith.mulf %119, %123 : vector<2x8x32xf32>
    %125 = vector.shape_cast %59 : vector<1x32xf32> to vector<1x1x32xf32>
    %126 = vector.broadcast %125 : vector<1x1x32xf32> to vector<2x8x32xf32>
    %127 = arith.mulf %124, %126 : vector<2x8x32xf32>
    %128 = vector.shape_cast %60 : vector<1x32xf32> to vector<1x1x32xf32>
    %129 = vector.broadcast %128 : vector<1x1x32xf32> to vector<2x8x32xf32>
    %130 = arith.addf %127, %129 : vector<2x8x32xf32>
    %c0_63 = arith.constant 0 : index
    %c0_64 = arith.constant 0 : index
    %c0_65 = arith.constant 0 : index
    %131 = vector.load %arg11[%c0_63, %c0_64, %c0_65] : memref<2x8x32xf32, #tpu.memory_space<vmem>>, vector<2x8x32xf32>
    tpu.vector_store %arg11[%c0_63, %c0_64, %c0_65], %130 {strides = array<i32>} : memref<2x8x32xf32, #tpu.memory_space<vmem>>, vector<2x8x32xf32>,
    return
  }
  func.func @transform_0(%arg0: i32) -> (i32, i32, i32) {
    %c0_i32 = arith.constant 0 : i32
    %c0_i32_0 = arith.constant 0 : i32
    %c0_i32_1 = arith.constant 0 : i32
    return %arg0, %c0_i32, %c0_i32_0 : i32, i32, i32
  }
  func.func @transform_1(%arg0: i32) -> (i32, i32, i32) {
    %c0_i32 = arith.constant 0 : i32
    %c0_i32_0 = arith.constant 0 : i32
    %c0_i32_1 = arith.constant 0 : i32
    return %arg0, %c0_i32, %c0_i32_0 : i32, i32, i32
  }
  func.func @transform_2(%arg0: i32) -> (i32, i32, i32) {
    %c0_i32 = arith.constant 0 : i32
    %c0_i32_0 = arith.constant 0 : i32
    %c0_i32_1 = arith.constant 0 : i32
    return %arg0, %c0_i32, %c0_i32_0 : i32, i32, i32
  }
  func.func @transform_3(%arg0: i32) -> (i32, i32, i32, i32) {
    %c0_i32 = arith.constant 0 : i32
    %c0_i32_0 = arith.constant 0 : i32
    %c0_i32_1 = arith.constant 0 : i32
    %c0_i32_2 = arith.constant 0 : i32
    %c0_i32_3 = arith.constant 0 : i32
    return %c0_i32, %c0_i32_0, %c0_i32_1, %c0_i32_2 : i32, i32, i32, i32
  }
  func.func @transform_4(%arg0: i32) -> (i32, i32, i32, i32) {
    %c0_i32 = arith.constant 0 : i32
    %c0_i32_0 = arith.constant 0 : i32
    %c0_i32_1 = arith.constant 0 : i32
    %c0_i32_2 = arith.constant 0 : i32
    %c0_i32_3 = arith.constant 0 : i32
    return %c0_i32, %c0_i32_0, %c0_i32_1, %c0_i32_2 : i32, i32, i32, i32
  }
  func.func @transform_5(%arg0: i32) -> (i32, i32, i32) {
    %c0_i32 = arith.constant 0 : i32
    %c0_i32_0 = arith.constant 0 : i32
    %c0_i32_1 = arith.constant 0 : i32
    %c0_i32_2 = arith.constant 0 : i32
    return %c0_i32, %c0_i32_0, %c0_i32_1 : i32, i32, i32
  }
  func.func @transform_6(%arg0: i32) -> (i32, i32, i32) {
    %c0_i32 = arith.constant 0 : i32
    %c0_i32_0 = arith.constant 0 : i32
    %c0_i32_1 = arith.constant 0 : i32
    %c0_i32_2 = arith.constant 0 : i32
    return %c0_i32, %c0_i32_0, %c0_i32_1 : i32, i32, i32
  }
  func.func @transform_7(%arg0: i32) -> (i32, i32, i32) {
    %c0_i32 = arith.constant 0 : i32
    %c0_i32_0 = arith.constant 0 : i32
    %c0_i32_1 = arith.constant 0 : i32
    %c0_i32_2 = arith.constant 0 : i32
    return %c0_i32, %c0_i32_0, %c0_i32_1 : i32, i32, i32
  }
  func.func @transform_8(%arg0: i32) -> (i32, i32) {
    %c0_i32 = arith.constant 0 : i32
    %c0_i32_0 = arith.constant 0 : i32
    %c0_i32_1 = arith.constant 0 : i32
    return %c0_i32, %c0_i32_0 : i32, i32
  }
  func.func @transform_9(%arg0: i32) -> (i32, i32) {
    %c0_i32 = arith.constant 0 : i32
    %c0_i32_0 = arith.constant 0 : i32
    %c0_i32_1 = arith.constant 0 : i32
    return %c0_i32, %c0_i32_0 : i32, i32
  }
  func.func @transform_10(%arg0: i32) -> (i32, i32, i32) {
    %c0_i32 = arith.constant 0 : i32
    %c0_i32_0 = arith.constant 0 : i32
    %c0_i32_1 = arith.constant 0 : i32
    return %arg0, %c0_i32, %c0_i32_0 : i32, i32, i32
  }
}

</mosaic_0001>

<bundles_post_ra>
// kernel: tpu_custom_call.1
= control target key start
LH: loop header
LB: loop body
LE: loop exit
PB: predicated region body
PF: predicated region fallthrough
CT: control target
= control target key end

     0   :  { %vm209_vm0 = vcmask 261120   ;;  %s2800_s0 = inlined_call_operand.vmem [shape: f32[2,8,32], index: 0, kind: input, shape index: {}]   ;;  %s2801_s1 = inlined_call_operand.vmem [shape: f32[2,8,32], index: 1, kind: input, shape index: {}]   ;;  %s2802_s2 = inlined_call_operand.vmem [shape: f32[2,8,32], index: 2, kind: input, shape index: {}]   ;;  %s2803_s3 = inlined_call_operand.vmem [shape: bf16[3,8,32,8], index: 3, kind: input, shape index: {}]   ;;  %s2804_s4 = inlined_call_operand.vmem [shape: f32[3,8,1,8], index: 4, kind: input, shape index: {}]   ;;  %s2805_s5 = inlined_call_operand.vmem [shape: bf16[8,8,32], index: 5, kind: input, shape index: {}]   ;;  %s2806_s6 = inlined_call_operand.vmem [shape: bf16[2,32,64], index: 6, kind: input, shape index: {}]   ;;  %s2807_s7 = inlined_call_operand.vmem [shape: bf16[2,64,32], index: 7, kind: input, shape index: {}]   ;;  %s2808_s8 = inlined_call_operand.vmem [shape: f32[1,64], index: 8, kind: input, shape index: {}]   ;;  %s2809_s9 = inlined_call_operand.vmem [shape: f32[6,32], index: 9, kind: input, shape index: {}]   ;;  %s2810_s10 = inlined_call_operand.hbm [shape: f32[2,8,32], index: 10, kind: output, shape index: {}]  }
   0x1   :  { %v2144_v0 = vld [vmem:[%s2803_s3 + $0x8] sm:$0xff]  ;;  %v2146_v1 = vld [vmem:[%s2803_s3 + $0x18] sm:$0xff]  ;;  %v2143_v4 = vld [vmem:[%s2803_s3] sm:$0xff] }
   0x2   :  { %v2148_v2 = vld [vmem:[%s2803_s3 + $0x28] sm:$0xff]  ;;  %v2150_v3 = vld [vmem:[%s2803_s3 + $0x38] sm:$0xff]  ;;  %219 = vmatpush.bf16.msra.mxu0 %v2144_v0  ;;  %247 = vmatpush.bf16.msra.mxu1 %v2146_v1  ;;  %v2145_v5 = vld [vmem:[%s2803_s3 + $0x10] sm:$0xff] }
   0x3   :  { %v37_v6 = vld [vmem:[%s2800_s0] sm:$0xff]  ;;  %272 = vmatpush.bf16.msra.mxu2 %v2148_v2  ;;  %297 = vmatpush.bf16.msra.mxu3 %v2150_v3  ;;  %v2149_v8 = vld [vmem:[%s2803_s3 + $0x30] sm:$0xff]  ;;  %v38_v9 = vld [vmem:[%s2800_s0 + $0x8] sm:$0xff] }
   0x4   :  { %v2147_v7 = vld [vmem:[%s2803_s3 + $0x20] sm:$0xff]  ;;  %v2152_v10 = vld [vmem:[%s2803_s3 + $0x48] sm:$0xff]  ;;  %v2154_v11 = vld [vmem:[%s2803_s3 + $0x58] sm:$0xff]  ;;  %v43_v12 = vpack.c.bf16 %v37_v6, %v37_v6  ;;  %v44_v13 = vpack.c.bf16 %v38_v9, %v38_v9 }
   0x5   :  { %v2156_v14 = vld [vmem:[%s2803_s3 + $0x68] sm:$0xff]  ;;  %v2158_v15 = vld [vmem:[%s2803_s3 + $0x78] sm:$0xff]  ;;  %v2151_v16 = vld [vmem:[%s2803_s3 + $0x40] sm:$0xff] }
   0x6   :  { %220 = vmatpush.bf16.msra.mxu0 %v2143_v4  ;;  %248 = vmatpush.bf16.msra.mxu1 %v2145_v5  ;;  %v2153_v17 = vld [vmem:[%s2803_s3 + $0x50] sm:$0xff]  ;;  %v2160_v18 = vld [vmem:[%s2803_s3 + $0x88] sm:$0xff]  ;;  %v2162_v19 = vld [vmem:[%s2803_s3 + $0x98] sm:$0xff] }
   0x7   :  { %273 = vmatpush.bf16.msra.mxu2 %v2147_v7  ;;  %298 = vmatpush.bf16.msra.mxu3 %v2149_v8  ;;  %v2155_v20 = vld [vmem:[%s2803_s3 + $0x60] sm:$0xff]  ;;  %v2157_v21 = vld [vmem:[%s2803_s3 + $0x70] sm:$0xff]  ;;  %v2164_v22 = vld [vmem:[%s2803_s3 + $0xa8] sm:$0xff] }
   0x8   :  { %v2166_v23 = vld [vmem:[%s2803_s3 + $0xb8] sm:$0xff]  ;;  %v2159_v24 = vld [vmem:[%s2803_s3 + $0x80] sm:$0xff]  ;;  %v2161_v25 = vld [vmem:[%s2803_s3 + $0x90] sm:$0xff] }
   0x9   :  { %1859 = vmatmul.msk.bf16.vlgmr.msra.gmra.mxu0 %vm209_vm0, %v43_v12  ;;  %1868 = vmatmul.msk.bf16.vlgmr.msra.gmra.mxu1 %vm209_vm0, %v44_v13  ;;  %v2163_v26 = vld [vmem:[%s2803_s3 + $0xa0] sm:$0xff]  ;;  %v2165_v27 = vld [vmem:[%s2803_s3 + $0xb0] sm:$0xff] }
   0xa   :  { %322 = vmatpush.bf16.msrb.mxu0 %v2152_v10  ;;  %347 = vmatpush.bf16.msrb.mxu1 %v2154_v11 }
   0xb   :  { %1877 = vmatmul.msk.bf16.vlgmr.msra.gmra.mxu2 %vm209_vm0, %v43_v12  ;;  %1886 = vmatmul.msk.bf16.vlgmr.msra.gmra.mxu3 %vm209_vm0, %v44_v13 }
   0xc   :  { %372 = vmatpush.bf16.msrb.mxu2 %v2156_v14  ;;  %397 = vmatpush.bf16.msrb.mxu3 %v2158_v15 }
   0xe   :  { %323 = vmatpush.bf16.msrb.mxu0 %v2151_v16  ;;  %348 = vmatpush.bf16.msrb.mxu1 %v2153_v17 }
  0x10   :  { %373 = vmatpush.bf16.msrb.mxu2 %v2155_v20  ;;  %398 = vmatpush.bf16.msrb.mxu3 %v2157_v21 }
  0x12   :  { %449 = vmatpush.bf16.msra.mxu0 %v2160_v18  ;;  %477 = vmatpush.bf16.msra.mxu1 %v2162_v19 }
  0x14   :  { %502 = vmatpush.bf16.msra.mxu2 %v2164_v22  ;;  %527 = vmatpush.bf16.msra.mxu3 %v2166_v23 }
  0x16   :  { %450 = vmatpush.bf16.msra.mxu0 %v2159_v24  ;;  %478 = vmatpush.bf16.msra.mxu1 %v2161_v25 }
  0x18   :  { %503 = vmatpush.bf16.msra.mxu2 %v2163_v26  ;;  %528 = vmatpush.bf16.msra.mxu3 %v2165_v27 }
  0x19   :  { %15 = vsyncpa [#allocation3], 0  ;;  %v2168_v28 = vld [vmem:[%s2803_s3 + $0xc8] sm:$0xff]  ;;  %v2170_v29 = vld [vmem:[%s2803_s3 + $0xd8] sm:$0xff]  ;;  %1895 = vmatmul.msk.bf16.vlgmr.msrb.gmra.mxu0 %vm209_vm0, %v43_v12  ;;  %1904 = vmatmul.msk.bf16.vlgmr.msrb.gmra.mxu1 %vm209_vm0, %v44_v13  ;;  %vm880_vm1 = vcmask 64512   ;;  %vm1140_vm2 = vcmask 1043456  }
  0x1a   :  { %v2172_v30 = vld [vmem:[%s2803_s3 + $0xe8] sm:$0xff]  ;;  %v2174_v31 = vld [vmem:[%s2803_s3 + $0xf8] sm:$0xff]  ;;  %552 = vmatpush.bf16.msrb.mxu0 %v2168_v28  ;;  %577 = vmatpush.bf16.msrb.mxu1 %v2170_v29  ;;  %v2167_v32 = vld [vmem:[%s2803_s3 + $0xc0] sm:$0xff]  ;;  %vm1642_vm10 = vcmask 523264   ;;  %s2304_s16 = smov 128   ;;  %s2305_s17 = smov 8  }
  0x1b   :  { %1913 = vmatmul.msk.bf16.vlgmr.msrb.gmra.mxu2 %vm209_vm0, %v43_v12  ;;  %1922 = vmatmul.msk.bf16.vlgmr.msrb.gmra.mxu3 %vm209_vm0, %v44_v13  ;;  %v2169_v33 = vld [vmem:[%s2803_s3 + $0xd0] sm:$0xff]  ;;  %v2171_v34 = vld [vmem:[%s2803_s3 + $0xe0] sm:$0xff]  ;;  %v40_v37 = vld [vmem:[%s2801_s1 + $0x8] sm:$0xff] }
  0x1c   :  { %602 = vmatpush.bf16.msrb.mxu2 %v2172_v30  ;;  %627 = vmatpush.bf16.msrb.mxu3 %v2174_v31  ;;  %v2173_v35 = vld [vmem:[%s2803_s3 + $0xf0] sm:$0xff]  ;;  %v39_v36 = vld [vmem:[%s2801_s1] sm:$0xff]  ;;  %v46_v39 = vpack.c.bf16 %v40_v37, %v40_v37  ;;  %v2180_v40 = vld [vmem:[%s2803_s3 + $0x128] sm:$0xff] }
  0x1d   :  { %v45_v38 = vpack.c.bf16 %v39_v36, %v39_v36  ;;  %v2176_v41 = vld [vmem:[%s2803_s3 + $0x108] sm:$0xff]  ;;  %v2178_v42 = vld [vmem:[%s2803_s3 + $0x118] sm:$0xff]  ;;  %v2179_v43 = vld [vmem:[%s2803_s3 + $0x120] sm:$0xff] }
  0x1e   :  { %553 = vmatpush.bf16.msrb.mxu0 %v2167_v32  ;;  %578 = vmatpush.bf16.msrb.mxu1 %v2169_v33  ;;  %v2175_v44 = vld [vmem:[%s2803_s3 + $0x100] sm:$0xff]  ;;  %v2177_v45 = vld [vmem:[%s2803_s3 + $0x110] sm:$0xff]  ;;  %v2182_v47 = vld [vmem:[%s2803_s3 + $0x138] sm:$0xff] }
  0x1f   :  { %v41_v46 = vld [vmem:[%s2802_s2] sm:$0xff]  ;;  %v42_v49 = vld [vmem:[%s2802_s2 + $0x8] sm:$0xff]  ;;  %v2181_v51 = vld [vmem:[%s2803_s3 + $0x130] sm:$0xff] }
  0x20   :  { %603 = vmatpush.bf16.msrb.mxu2 %v2171_v34  ;;  %628 = vmatpush.bf16.msrb.mxu3 %v2173_v35  ;;  %v47_v48 = vpack.c.bf16 %v41_v46, %v41_v46  ;;  %v48_v50 = vpack.c.bf16 %v42_v49, %v42_v49  ;;  %v2188_v52 = vld [vmem:[%s2803_s3 + $0x168] sm:$0xff]  ;;  %v2186_v54 = vld [vmem:[%s2803_s3 + $0x158] sm:$0xff]  ;;  %v2187_v55 = vld [vmem:[%s2803_s3 + $0x160] sm:$0xff] }
  0x21   :  { %v2184_v53 = vld [vmem:[%s2803_s3 + $0x148] sm:$0xff]  ;;  %v2183_v56 = vld [vmem:[%s2803_s3 + $0x140] sm:$0xff]  ;;  %v2185_v57 = vld [vmem:[%s2803_s3 + $0x150] sm:$0xff] }
  0x22   :  { %v2190_v58 = vld [vmem:[%s2803_s3 + $0x178] sm:$0xff]  ;;  %v2189_v59 = vld [vmem:[%s2803_s3 + $0x170] sm:$0xff]  ;;  %v2215_v10 = vld [vmem:[%s2804_s4 + $0x8] ss:$0 sm:$0xff] }
  0x23   :  { %v2216_v11 = vld [vmem:[%s2804_s4 + $0x9] ss:$0 sm:$0xff]  ;;  %v2207_v18 = vld [vmem:[%s2804_s4] ss:$0 sm:$0xff]  ;;  %v2208_v21 = vld [vmem:[%s2804_s4 + $0x1] ss:$0 sm:$0xff] }
  0x24   :  { %v2217_v22 = vld [vmem:[%s2804_s4 + $0xa] ss:$0 sm:$0xff]  ;;  %v2218_v23 = vld [vmem:[%s2804_s4 + $0xb] ss:$0 sm:$0xff]  ;;  %v2209_v34 = vld [vmem:[%s2804_s4 + $0x2] ss:$0 sm:$0xff] }
  0x25   :  { %v2210_v35 = vld [vmem:[%s2804_s4 + $0x3] ss:$0 sm:$0xff] }
  0x29   :  { %1931 = vmatmul.msk.bf16.vlgmr.msra.gmra.mxu0 %vm209_vm0, %v45_v38  ;;  %1940 = vmatmul.msk.bf16.vlgmr.msra.gmra.mxu1 %vm209_vm0, %v46_v39 }
  0x2a   :  { %679 = vmatpush.bf16.msra.mxu0 %v2176_v41  ;;  %707 = vmatpush.bf16.msra.mxu1 %v2178_v42  ;;  %v2219_v42 = vld [vmem:[%s2804_s4 + $0xc] ss:$0 sm:$0xff] }
  0x2b   :  { %1949 = vmatmul.msk.bf16.vlgmr.msra.gmra.mxu2 %vm209_vm0, %v45_v38  ;;  %1958 = vmatmul.msk.bf16.vlgmr.msra.gmra.mxu3 %vm209_vm0, %v46_v39 }
  0x2c   :  { %732 = vmatpush.bf16.msra.mxu2 %v2180_v40  ;;  %757 = vmatpush.bf16.msra.mxu3 %v2182_v47 }
  0x2e   :  { %680 = vmatpush.bf16.msra.mxu0 %v2175_v44  ;;  %708 = vmatpush.bf16.msra.mxu1 %v2177_v45 }
  0x30   :  { %733 = vmatpush.bf16.msra.mxu2 %v2179_v43  ;;  %758 = vmatpush.bf16.msra.mxu3 %v2181_v51  ;;  %v2220_v43 = vld [vmem:[%s2804_s4 + $0xd] ss:$0 sm:$0xff] }
  0x39   :  { %1967 = vmatmul.msk.bf16.vlgmr.msrb.gmra.mxu0 %vm209_vm0, %v45_v38  ;;  %1976 = vmatmul.msk.bf16.vlgmr.msrb.gmra.mxu1 %vm209_vm0, %v46_v39 }
  0x3a   :  { %782 = vmatpush.bf16.msrb.mxu0 %v2184_v53  ;;  %807 = vmatpush.bf16.msrb.mxu1 %v2186_v54  ;;  %v2211_v54 = vld [vmem:[%s2804_s4 + $0x4] ss:$0 sm:$0xff] }
  0x3b   :  { %1985 = vmatmul.msk.bf16.vlgmr.msrb.gmra.mxu2 %vm209_vm0, %v45_v38  ;;  %1994 = vmatmul.msk.bf16.vlgmr.msrb.gmra.mxu3 %vm209_vm0, %v46_v39 }
  0x3c   :  { %832 = vmatpush.bf16.msrb.mxu2 %v2188_v52  ;;  %857 = vmatpush.bf16.msrb.mxu3 %v2190_v58  ;;  %v2221_v58 = vld [vmem:[%s2804_s4 + $0xe] ss:$0 sm:$0xff] }
  0x3e   :  { %783 = vmatpush.bf16.msrb.mxu0 %v2183_v56  ;;  %808 = vmatpush.bf16.msrb.mxu1 %v2185_v57  ;;  %v2212_v57 = vld [vmem:[%s2804_s4 + $0x5] ss:$0 sm:$0xff] }
  0x40   :  { %833 = vmatpush.bf16.msrb.mxu2 %v2187_v55  ;;  %858 = vmatpush.bf16.msrb.mxu3 %v2189_v59  ;;  %v2222_v59 = vld [vmem:[%s2804_s4 + $0xf] ss:$0 sm:$0xff] }
  0x49   :  { %2003 = vmatmul.msk.bf16.vlgmr.msra.gmra.mxu0 %vm209_vm0, %v47_v48  ;;  %2012 = vmatmul.msk.bf16.vlgmr.msra.gmra.mxu1 %vm209_vm0, %v48_v50 }
  0x4b   :  { %2021 = vmatmul.msk.bf16.vlgmr.msra.gmra.mxu2 %vm209_vm0, %v47_v48  ;;  %2030 = vmatmul.msk.bf16.vlgmr.msra.gmra.mxu3 %vm209_vm0, %v48_v50 }
  0x59   :  { %2039 = vmatmul.msk.bf16.vlgmr.msrb.gmra.mxu0 %vm209_vm0, %v47_v48  ;;  %2048 = vmatmul.msk.bf16.vlgmr.msrb.gmra.mxu1 %vm209_vm0, %v48_v50 }
  0x5b   :  { %2057 = vmatmul.msk.bf16.vlgmr.msrb.gmra.mxu2 %vm209_vm0, %v47_v48  ;;  %2066 = vmatmul.msk.bf16.vlgmr.msrb.gmra.mxu3 %vm209_vm0, %v48_v50 }
  0x86   :  { %v222_v60 = vpop.f32.mrf.mxu0  ;;  %v250_v61 = vpop.f32.mrf.mxu1 }
  0x87   :  { %v223_v28 = vadd.f32 %v2207_v18, %v222_v60  ;;  %v251_v29 = vadd.f32 %v2208_v21, %v250_v61 }
  0x89   :  { %v864_v38 = vpack.c.bf16 %v223_v28, %v223_v28  ;;  %v865_v39 = vpack.c.bf16 %v251_v29, %v251_v29 }
  0x8e   :  { %v275_v62 = vpop.f32.mrf.mxu2  ;;  %v300_v63 = vpop.f32.mrf.mxu3 }
  0x8f   :  { %v224_v0 = vpop.f32.mrf.mxu0  ;;  %v252_v1 = vpop.f32.mrf.mxu1  ;;  %v276_v44 = vadd.f32 %v2209_v34, %v275_v62  ;;  %v301_v45 = vadd.f32 %v2210_v35, %v300_v63 }
  0x91   :  { %v866_v52 = vpack.c.bf16 %v276_v44, %v276_v44  ;;  %v867_v53 = vpack.c.bf16 %v301_v45, %v301_v45 }
  0x96   :  { %v277_v2 = vpop.f32.mrf.mxu2  ;;  %v302_v3 = vpop.f32.mrf.mxu3 }
  0x97   :  { %v2547_v4 = vpop.f32.mrf.mxu0  ;;  %v2549_v5 = vpop.f32.mrf.mxu1 }
  0x98   :  { %v326_v0 = vadd.f32 %v2211_v54, %v2547_v4  ;;  %v351_v1 = vadd.f32 %v2212_v57, %v2549_v5 }
  0x9e   :  { %v2551_v6 = vpop.f32.mrf.mxu2  ;;  %v2553_v7 = vpop.f32.mrf.mxu3 }
  0x9f   :  { %v327_v8 = vpop.f32.mrf.mxu0  ;;  %v352_v9 = vpop.f32.mrf.mxu1 }
  0xa6   :  { %v377_v12 = vpop.f32.mrf.mxu2  ;;  %v402_v13 = vpop.f32.mrf.mxu3 }
  0xa7   :  { %v452_v14 = vpop.f32.mrf.mxu0  ;;  %v480_v15 = vpop.f32.mrf.mxu1 }
  0xa8   :  { %v453_v16 = vadd.f32 %v2215_v10, %v452_v14  ;;  %v481_v17 = vadd.f32 %v2216_v11, %v480_v15  ;;  %v2213_v10 = vld [vmem:[%s2804_s4 + $0x6] ss:$0 sm:$0xff]  ;;  %v2214_v11 = vld [vmem:[%s2804_s4 + $0x7] ss:$0 sm:$0xff]  ;;  %v868_v14 = vpack.c.bf16 %v326_v0, %v326_v0  ;;  %v869_v15 = vpack.c.bf16 %v351_v1, %v351_v1 }
  0xaa   :  { %v872_v19 = vpack.c.bf16 %v453_v16, %v453_v16  ;;  %v873_v20 = vpack.c.bf16 %v481_v17, %v481_v17  ;;  %v376_v16 = vadd.f32 %v2213_v10, %v2551_v6  ;;  %v401_v17 = vadd.f32 %v2214_v11, %v2553_v7  ;;  %v2224_v6 = vld [vmem:[%s2804_s4 + $0x11] ss:$0 sm:$0xff] }
  0xac   :  { %v885_v24 = vsel %vm880_vm1, %v872_v19, 0  ;;  %v904_v25 = vsel %vm880_vm1, %v873_v20, 0  ;;  %v870_v20 = vpack.c.bf16 %v376_v16, %v376_v16  ;;  %v871_v21 = vpack.c.bf16 %v401_v17, %v401_v17 }
  0xad   :  { %894 = vmatpush.bf16.xpose.msra.mxu0 %v885_v24  ;;  %913 = vmatpush.bf16.xpose.msra.mxu1 %v904_v25 }
  0xae   :  { %v505_v26 = vpop.f32.mrf.mxu2  ;;  %v530_v27 = vpop.f32.mrf.mxu3 }
  0xaf   :  { %v506_v30 = vadd.f32 %v2217_v22, %v505_v26  ;;  %v531_v31 = vadd.f32 %v2218_v23, %v530_v27  ;;  %v454_v32 = vpop.f32.mrf.mxu0  ;;  %v482_v33 = vpop.f32.mrf.mxu1  ;;  %v2223_v22 = vld [vmem:[%s2804_s4 + $0x10] ss:$0 sm:$0xff]  ;;  %v2225_v26 = vld [vmem:[%s2804_s4 + $0x12] ss:$0 sm:$0xff] }
  0xb1   :  { %v874_v36 = vpack.c.bf16 %v506_v30, %v506_v30  ;;  %v875_v37 = vpack.c.bf16 %v531_v31, %v531_v31 }
  0xb3   :  { %v923_v40 = vsel %vm880_vm1, %v874_v36, 0  ;;  %v942_v41 = vsel %vm880_vm1, %v875_v37, 0  ;;  %v2226_v37 = vld [vmem:[%s2804_s4 + $0x13] ss:$0 sm:$0xff] }
  0xb4   :  { %932 = vmatpush.bf16.xpose.msra.mxu2 %v923_v40  ;;  %951 = vmatpush.bf16.xpose.msra.mxu3 %v942_v41  ;;  %v2227_v41 = vld [vmem:[%s2804_s4 + $0x14] ss:$0 sm:$0xff] }
  0xb5   :  { %2067 = vmatmul.msk.bf16.vlgmr.msra.gmra.mxu0 %vm880_vm1, %v864_v38  ;;  %2068 = vmatmul.msk.bf16.vlgmr.msra.gmra.mxu1 %vm880_vm1, %v865_v39 }
  0xb6   :  { %v507_v46 = vpop.f32.mrf.mxu2  ;;  %v532_v47 = vpop.f32.mrf.mxu3 }
  0xb7   :  { %v555_v48 = vpop.f32.mrf.mxu0  ;;  %v580_v49 = vpop.f32.mrf.mxu1 }
  0xb8   :  { %v556_v50 = vadd.f32 %v2219_v42, %v555_v48  ;;  %v581_v51 = vadd.f32 %v2220_v43, %v580_v49  ;;  %v2228_v42 = vld [vmem:[%s2804_s4 + $0x15] ss:$0 sm:$0xff]  ;;  %v2229_v49 = vld [vmem:[%s2804_s4 + $0x16] ss:$0 sm:$0xff] }
  0xba   :  { %v876_v55 = vpack.c.bf16 %v556_v50, %v556_v50  ;;  %v877_v56 = vpack.c.bf16 %v581_v51, %v581_v51 }
  0xbb   :  { %2069 = vmatmul.msk.bf16.vlgmr.msra.gmra.mxu2 %vm880_vm1, %v866_v52  ;;  %2070 = vmatmul.msk.bf16.vlgmr.msra.gmra.mxu3 %vm880_vm1, %v867_v53 }
  0xbc   :  { %v961_v60 = vsel %vm880_vm1, %v876_v55, 0  ;;  %v980_v61 = vsel %vm880_vm1, %v877_v56, 0 }
  0xbd   :  { %970 = vmatpush.bf16.xpose.msrb.mxu0 %v961_v60  ;;  %989 = vmatpush.bf16.xpose.msrb.mxu1 %v980_v61  ;;  %v2230_v61 = vld [vmem:[%s2804_s4 + $0x17] ss:$0 sm:$0xff] }
  0xbe   :  { %v605_v62 = vpop.f32.mrf.mxu2  ;;  %v630_v63 = vpop.f32.mrf.mxu3 }
  0xbf   :  { %v606_v2 = vadd.f32 %v2221_v58, %v605_v62  ;;  %v631_v3 = vadd.f32 %v2222_v59, %v630_v63  ;;  %v557_v8 = vpop.f32.mrf.mxu0  ;;  %v582_v9 = vpop.f32.mrf.mxu1 }
  0xc1   :  { %v878_v12 = vpack.c.bf16 %v606_v2, %v606_v2  ;;  %v879_v13 = vpack.c.bf16 %v631_v3, %v631_v3 }
  0xc3   :  { %v999_v4 = vsel %vm880_vm1, %v878_v12, 0  ;;  %v1018_v5 = vsel %vm880_vm1, %v879_v13, 0 }
  0xc4   :  { %1008 = vmatpush.bf16.xpose.msrb.mxu2 %v999_v4  ;;  %1027 = vmatpush.bf16.xpose.msrb.mxu3 %v1018_v5 }
  0xc5   :  { %2071 = vmatmul.msk.bf16.vlgmr.msrb.gmra.mxu0 %vm880_vm1, %v868_v14  ;;  %2072 = vmatmul.msk.bf16.vlgmr.msrb.gmra.mxu1 %vm880_vm1, %v869_v15 }
  0xc6   :  { %v607_v18 = vpop.f32.mrf.mxu2  ;;  %v632_v19 = vpop.f32.mrf.mxu3 }
  0xc7   :  { %v682_v7 = vpop.f32.mrf.mxu0  ;;  %v710_v23 = vpop.f32.mrf.mxu1 }
  0xc8   :  { %v683_v24 = vadd.f32 %v2223_v22, %v682_v7  ;;  %v711_v25 = vadd.f32 %v2224_v6, %v710_v23 }
  0xca   :  { %v1129_v27 = vpack.c.bf16 %v683_v24, %v683_v24  ;;  %v1130_v28 = vpack.c.bf16 %v711_v25, %v711_v25 }
  0xcb   :  { %2073 = vmatmul.msk.bf16.vlgmr.msrb.gmra.mxu2 %vm880_vm1, %v870_v20  ;;  %2074 = vmatmul.msk.bf16.vlgmr.msrb.gmra.mxu3 %vm880_vm1, %v871_v21 }
  0xcc   :  { %v1142_v30 = vsel %vm1140_vm2, %v1129_v27, 0  ;;  %v1161_v31 = vsel %vm1140_vm2, %v1130_v28, 0 }
  0xcd   :  { %1151 = vmatpush.bf16.msra.mxu0 %v1142_v30  ;;  %1170 = vmatpush.bf16.msra.mxu1 %v1161_v31 }
  0xce   :  { %v735_v29 = vpop.f32.mrf.mxu2  ;;  %v760_v38 = vpop.f32.mrf.mxu3 }
  0xcf   :  { %v736_v32 = vadd.f32 %v2225_v26, %v735_v29  ;;  %v684_v34 = vpop.f32.mrf.mxu0  ;;  %v712_v35 = vpop.f32.mrf.mxu1  ;;  %v761_v40 = vadd.f32 %v2226_v37, %v760_v38 }
  0xd1   :  { %v1131_v33 = vpack.c.bf16 %v736_v32, %v736_v32  ;;  %v1132_v43 = vpack.c.bf16 %v761_v40, %v761_v40 }
  0xd3   :  { %v1180_v36 = vsel %vm1140_vm2, %v1131_v33, 0  ;;  %v1199_v46 = vsel %vm1140_vm2, %v1132_v43, 0 }
  0xd4   :  { %1189 = vmatpush.bf16.msra.mxu2 %v1180_v36  ;;  %1208 = vmatpush.bf16.msra.mxu3 %v1199_v46 }
  0xd6   :  { %v737_v39 = vpop.f32.mrf.mxu2  ;;  %v762_v52 = vpop.f32.mrf.mxu3 }
  0xd7   :  { %v785_v44 = vpop.f32.mrf.mxu0  ;;  %v810_v45 = vpop.f32.mrf.mxu1 }
  0xd8   :  { %v786_v47 = vadd.f32 %v2227_v41, %v785_v44  ;;  %v811_v48 = vadd.f32 %v2228_v42, %v810_v45 }
  0xda   :  { %v1133_v50 = vpack.c.bf16 %v786_v47, %v786_v47  ;;  %v1134_v51 = vpack.c.bf16 %v811_v48, %v811_v48 }
  0xdc   :  { %v1218_v54 = vsel %vm1140_vm2, %v1133_v50, 0  ;;  %v1237_v55 = vsel %vm1140_vm2, %v1134_v51, 0 }
  0xdd   :  { %1227 = vmatpush.bf16.msrb.mxu0 %v1218_v54  ;;  %1246 = vmatpush.bf16.msrb.mxu1 %v1237_v55 }
  0xde   :  { %v835_v53 = vpop.f32.mrf.mxu2  ;;  %v860_v62 = vpop.f32.mrf.mxu3 }
  0xdf   :  { %v836_v56 = vadd.f32 %v2229_v49, %v835_v53  ;;  %v787_v58 = vpop.f32.mrf.mxu0  ;;  %v812_v59 = vpop.f32.mrf.mxu1  ;;  %v861_v0 = vadd.f32 %v2230_v61, %v860_v62 }
  0xe1   :  { %v1135_v57 = vpack.c.bf16 %v836_v56, %v836_v56  ;;  %v1136_v1 = vpack.c.bf16 %v861_v0, %v861_v0 }
  0xe3   :  { %v1256_v60 = vsel %vm1140_vm2, %v1135_v57, 0  ;;  %v1275_v2 = vsel %vm1140_vm2, %v1136_v1, 0 }
  0xe4   :  { %1265 = vmatpush.bf16.msrb.mxu2 %v1256_v60  ;;  %1284 = vmatpush.bf16.msrb.mxu3 %v1275_v2 }
  0xe6   :  { %v837_v63 = vpop.f32.mrf.mxu2  ;;  %v862_v3 = vpop.f32.mrf.mxu3 }
 0x132   :  { %v896_v8 = vpop.f32.mrf.mxu0  ;;  %v915_v9 = vpop.f32.mrf.mxu1 }
 0x133   :  { %v1033_v10 = vsel %vm880_vm1, %v896_v8, -inf  ;;  %v1036_v13 = vsel %vm880_vm1, %v915_v9, -inf }
 0x134   :  { %1034 = vmax.xlane.f32.xlu1 %v1033_v10 }
 0x13a   :  { %v898_v11 = vpop.f32.mrf.mxu0  ;;  %v917_v12 = vpop.f32.mrf.mxu1 }
 0x13c   :  { %1037 = vmax.xlane.f32.xlu1 %v1036_v13 }
 0x13e   :  { %v934_v14 = vpop.f32.mrf.mxu2  ;;  %v953_v15 = vpop.f32.mrf.mxu3 }
 0x13f   :  { %v1039_v4 = vsel %vm880_vm1, %v934_v14, -inf  ;;  %v1042_v20 = vsel %vm880_vm1, %v953_v15, -inf }
 0x140   :  { %1040 = vmax.xlane.f32.xlu0 %v1039_v4 }
 0x142   :  { %v972_v5 = vpop.f32.mrf.mxu0  ;;  %v991_v16 = vpop.f32.mrf.mxu1 }
 0x143   :  { %v1048_v17 = vsel %vm880_vm1, %v991_v16, -inf  ;;  %v1045_v24 = vsel %vm880_vm1, %v972_v5, -inf }
 0x144   :  { %1049 = vmax.xlane.f32.xlu1 %v1048_v17 }
 0x146   :  { %v936_v18 = vpop.f32.mrf.mxu2  ;;  %v955_v19 = vpop.f32.mrf.mxu3 }
 0x148   :  { %1043 = vmax.xlane.f32.xlu0 %v1042_v20 }
 0x14a   :  { %v974_v21 = vpop.f32.mrf.mxu0  ;;  %v993_v22 = vpop.f32.mrf.mxu1 }
 0x14e   :  { %v1010_v6 = vpop.f32.mrf.mxu2  ;;  %v1029_v7 = vpop.f32.mrf.mxu3 }
 0x14f   :  { %v1051_v23 = vsel %vm880_vm1, %v1010_v6, -inf  ;;  %v1054_v27 = vsel %vm880_vm1, %v1029_v7, -inf }
 0x150   :  { %1052 = vmax.xlane.f32.xlu2 %v1051_v23  ;;  %1046 = vmax.xlane.f32.xlu0 %v1045_v24 }
 0x156   :  { %v1012_v25 = vpop.f32.mrf.mxu2  ;;  %v1031_v26 = vpop.f32.mrf.mxu3 }
 0x158   :  { %1055 = vmax.xlane.f32.xlu2 %v1054_v27 }
 0x1a7   :  { %v1035_v28 = vpop.xlane.xlu1 %1034 }
 0x1a8   :  { %v1057_v29 = vsub.f32 %v896_v8, %v1035_v28 }
 0x1aa   :  { %v1065_v30 = vmul.f32 1.442695, %v1057_v29 }
 0x1ac   :  { %2232 = vpow2.f32 %v1065_v30 }
 0x1af   :  { %v1038_v32 = vpop.xlane.xlu1 %1037 }
 0x1b0   :  { %v1058_v36 = vsub.f32 %v915_v9, %v1038_v32 }
 0x1b2   :  { %v2233_v31 = vpop.eup %2232  ;;  %v1067_v38 = vmul.f32 1.442695, %v1058_v36  ;;  %v1298_v36 = vld [vmem:[%s2805_s5] sm:$0xf] }
 0x1b3   :  { %v1041_v33 = vpop.xlane.xlu0 %1040  ;;  %v1081_v34 = vsel %vm880_vm1, %v2233_v31, 0.0 }
 0x1b4   :  { %v1059_v35 = vsub.f32 %v934_v14, %v1041_v33  ;;  %1082 = vadd.xlane.f32.xlu1 %v1081_v34 }
 0x1b6   :  { %v1069_v37 = vmul.f32 1.442695, %v1059_v35 }
 0x1b7   :  { %v1050_v44 = vpop.xlane.xlu1 %1049 }
 0x1b8   :  { %2234 = vpow2.f32 %v1069_v37  ;;  %v1062_v51 = vsub.f32 %v991_v16, %v1050_v44  ;;  %v1310_v37 = vsel %vm1140_vm2, %v1298_v36, 0  ;;  %v1302_v44 = vld [vmem:[%s2805_s5 + $0x10] sm:$0xf] }
 0x1b9   :  { %2236 = vpow2.f32 %v1067_v38  ;;  %v1300_v38 = vld [vmem:[%s2805_s5 + $0x8] sm:$0xf] }
 0x1ba   :  { %v1075_v56 = vmul.f32 1.442695, %v1062_v51 }
 0x1bb   :  { %v1044_v39 = vpop.xlane.xlu0 %1043 }
 0x1bc   :  { %v1060_v40 = vsub.f32 %v953_v15, %v1044_v39  ;;  %v1348_v39 = vsel %vm1140_vm2, %v1300_v38, 0 }
 0x1be   :  { %v2235_v41 = vpop.eup %2234  ;;  %v1071_v42 = vmul.f32 1.442695, %v1060_v40  ;;  %v1299_v40 = vld [vmem:[%s2805_s5 + $0x4] sm:$0xf] }
 0x1bf   :  { %v1087_v43 = vsel %vm880_vm1, %v2235_v41, 0.0  ;;  %v2237_v47 = vpop.eup %2236 }
 0x1c0   :  { %2238 = vpow2.f32 %v1071_v42  ;;  %1088 = vadd.xlane.f32.xlu2 %v1087_v43  ;;  %v1084_v54 = vsel %vm880_vm1, %v2237_v47, 0.0  ;;  %v1301_v42 = vld [vmem:[%s2805_s5 + $0xc] sm:$0xf] }
 0x1c1   :  { %v1367_v43 = vsel %vm1140_vm2, %v1301_v42, 0 }
 0x1c3   :  { %v1053_v45 = vpop.xlane.xlu2 %1052  ;;  %v1047_v46 = vpop.xlane.xlu0 %1046 }
 0x1c4   :  { %v1063_v48 = vsub.f32 %v1010_v6, %v1053_v45  ;;  %v1061_v49 = vsub.f32 %v972_v5, %v1047_v46  ;;  %v1386_v45 = vsel %vm1140_vm2, %v1302_v44, 0  ;;  %v2302_v44 = vmov 32.0  }
 0x1c6   :  { %v2239_v50 = vpop.eup %2238  ;;  %v1077_v52 = vmul.f32 1.442695, %v1063_v48  ;;  %v1073_v53 = vmul.f32 1.442695, %v1061_v49  ;;  %v1304_v48 = vld [vmem:[%s2805_s5 + $0x18] sm:$0xf] }
 0x1c7   :  { %v1090_v55 = vsel %vm880_vm1, %v2239_v50, 0.0  ;;  %v1424_v49 = vsel %vm1140_vm2, %v1304_v48, 0 }
 0x1c8   :  { %2240 = vpow2.f32 %v1077_v52  ;;  %1085 = vadd.xlane.f32.xlu2 %v1084_v54  ;;  %1091 = vadd.xlane.f32.xlu0 %v1090_v55  ;;  %v1305_v52 = vld [vmem:[%s2805_s5 + $0x1c] sm:$0xf] }
 0x1c9   :  { %2242 = vpow2.f32 %v1073_v53  ;;  %v1443_v53 = vsel %vm1140_vm2, %v1305_v52, 0 }
 0x1ca   :  { %2244 = vpow2.f32 %v1075_v56 }
 0x1cb   :  { %v1056_v57 = vpop.xlane.xlu2 %1055 }
 0x1cc   :  { %v1064_v58 = vsub.f32 %v1029_v7, %v1056_v57 }
 0x1ce   :  { %v2241_v59 = vpop.eup %2240  ;;  %v1079_v60 = vmul.f32 1.442695, %v1064_v58 }
 0x1cf   :  { %v2243_v61 = vpop.eup %2242  ;;  %v1099_v62 = vsel %vm880_vm1, %v2241_v59, 0.0 }
 0x1d0   :  { %2246 = vpow2.f32 %v1079_v60  ;;  %1100 = vadd.xlane.f32.xlu0 %v1099_v62  ;;  %v1093_v63 = vsel %vm880_vm1, %v2243_v61, 0.0  ;;  %v2245_v0 = vpop.eup %2244 }
 0x1d1   :  { %1094 = vadd.xlane.f32.xlu2 %v1093_v63  ;;  %v1096_v3 = vsel %vm880_vm1, %v2245_v0, 0.0 }
 0x1d6   :  { %v2247_v1 = vpop.eup %2246 }
 0x1d7   :  { %v1102_v2 = vsel %vm880_vm1, %v2247_v1, 0.0 }
 0x1d8   :  { %1103 = vadd.xlane.f32.xlu1 %v1102_v2  ;;  %1097 = vadd.xlane.f32.xlu0 %v1096_v3 }
 0x227   :  { %v1083_v8 = vpop.xlane.xlu1 %1082 }
 0x228   :  { %2248 = vrcp.f32 %v1083_v8 }
 0x22e   :  { %v2249_v9 = vpop.eup %2248 }
 0x22f   :  { %v1113_v10 = vmul.f32 %v2249_v9, %v2233_v31 }
 0x231   :  { %v1121_v11 = vpack.c.bf16 %v1113_v10, %v1113_v10 }
 0x233   :  { %v1089_v12 = vpop.xlane.xlu2 %1088  ;;  %2075 = vmatmul.msk.bf16.vlgmr.msra.gmra.mxu0 %vm880_vm1, %v1121_v11 }
 0x234   :  { %2250 = vrcp.f32 %v1089_v12  ;;  %1319 = vmatpush.bf16.msra.mxu0 %v1310_v37 }
 0x23a   :  { %v2251_v13 = vpop.eup %2250 }
 0x23b   :  { %v1115_v14 = vmul.f32 %v2251_v13, %v2235_v41  ;;  %v1086_v15 = vpop.xlane.xlu2 %1085  ;;  %v1092_v4 = vpop.xlane.xlu0 %1091  ;;  %v1329_v41 = vsel %vm1140_vm2, %v1299_v40, 0 }
 0x23c   :  { %2252 = vrcp.f32 %v1086_v15 }
 0x23d   :  { %v1123_v5 = vpack.c.bf16 %v1115_v14, %v1115_v14  ;;  %2254 = vrcp.f32 %v1092_v4 }
 0x23f   :  { %2077 = vmatmul.msk.bf16.vlgmr.msra.gmra.mxu2 %vm880_vm1, %v1123_v5 }
 0x240   :  { %1357 = vmatpush.bf16.msra.mxu2 %v1348_v39  ;;  %v2275_v39 = vld [vmem:[%s2800_s0 + $0x8] sm:$0xff] }
 0x242   :  { %v2253_v16 = vpop.eup %2252 }
 0x243   :  { %v2255_v17 = vpop.eup %2254  ;;  %v1114_v18 = vmul.f32 %v2253_v16, %v2237_v47  ;;  %v1101_v19 = vpop.xlane.xlu0 %1100 }
 0x244   :  { %v1116_v20 = vmul.f32 %v2255_v17, %v2239_v50  ;;  %v1095_v21 = vpop.xlane.xlu2 %1094  ;;  %2256 = vrcp.f32 %v1101_v19  ;;  %v1303_v50 = vld [vmem:[%s2805_s5 + $0x14] sm:$0xf] }
 0x245   :  { %v1122_v22 = vpack.c.bf16 %v1114_v18, %v1114_v18  ;;  %2258 = vrcp.f32 %v1095_v21  ;;  %v1405_v51 = vsel %vm1140_vm2, %v1303_v50, 0 }
 0x246   :  { %v1124_v6 = vpack.c.bf16 %v1116_v20, %v1116_v20 }
 0x247   :  { %2076 = vmatmul.msk.bf16.vlgmr.msra.gmra.mxu1 %vm880_vm1, %v1122_v22 }
 0x248   :  { %2078 = vmatmul.msk.bf16.vlgmr.msra.gmra.mxu3 %vm880_vm1, %v1124_v6  ;;  %1338 = vmatpush.bf16.msra.mxu1 %v1329_v41 }
 0x249   :  { %1376 = vmatpush.bf16.msra.mxu3 %v1367_v43 }
 0x24a   :  { %v2257_v7 = vpop.eup %2256 }
 0x24b   :  { %v2259_v23 = vpop.eup %2258  ;;  %v1119_v24 = vmul.f32 %v2257_v7, %v2241_v59  ;;  %v1104_v25 = vpop.xlane.xlu1 %1103 }
 0x24c   :  { %v1098_v26 = vpop.xlane.xlu0 %1097  ;;  %v1117_v27 = vmul.f32 %v2259_v23, %v2243_v61  ;;  %2260 = vrcp.f32 %v1104_v25  ;;  %v2722_v23 = vld [vmem:[%s2809_s9] sm:$0x3f] }
 0x24d   :  { %v1127_v28 = vpack.c.bf16 %v1119_v24, %v1119_v24  ;;  %2262 = vrcp.f32 %v1098_v26 }
 0x24e   :  { %v1125_v29 = vpack.c.bf16 %v1117_v27, %v1117_v27  ;;  %2264 = vrcp.f32 %v2302_v44 }
 0x24f   :  { %2081 = vmatmul.msk.bf16.vlgmr.msrb.gmra.mxu2 %vm880_vm1, %v1127_v28  ;;  %v1467_v28 = vperm.slane %v2722_v23, 4 }
 0x250   :  { %2079 = vmatmul.msk.bf16.vlgmr.msrb.gmra.mxu0 %vm880_vm1, %v1125_v29  ;;  %1433 = vmatpush.bf16.msrb.mxu2 %v1424_v49  ;;  %v2274_v29 = vld [vmem:[%s2800_s0] sm:$0xff]  ;;  %s1759_s0 = sshll.u32 %s2810_s10, 4  ;;  %s1760_s0 = int_to_ptr.hbm [resolvable:$true] %s1759_s0 }
 0x251   :  { %1395 = vmatpush.bf16.msrb.mxu0 %v1386_v45 }
 0x252   :  { %v2261_v30 = vpop.eup %2260 }
 0x253   :  { %v2263_v31 = vpop.eup %2262  ;;  %v1120_v32 = vmul.f32 %v2261_v30, %v2247_v1 }
 0x254   :  { %v1118_v33 = vmul.f32 %v2263_v31, %v2245_v0  ;;  %v2265_v45 = vpop.eup %2264 }
 0x255   :  { %v1128_v34 = vpack.c.bf16 %v1120_v32, %v1120_v32  ;;  %vm1481_vm3 = vweird.f32 %v2265_v45 }
 0x256   :  { %v1126_v35 = vpack.c.bf16 %v1118_v33, %v1118_v33 }
 0x258   :  { %2080 = vmatmul.msk.bf16.vlgmr.msrb.gmra.mxu1 %vm880_vm1, %v1126_v35  ;;  %2082 = vmatmul.msk.bf16.vlgmr.msrb.gmra.mxu3 %vm880_vm1, %v1128_v34 }
 0x259   :  { %1414 = vmatpush.bf16.msrb.mxu1 %v1405_v51  ;;  %1452 = vmatpush.bf16.msrb.mxu3 %v1443_v53 }
 0x2b0   :  { %v1153_v46 = vpop.f32.mrf.mxu0 }
 0x2b1   :  { %v1290_v47 = vpack.c.bf16 %v1153_v46, %v1153_v46  ;;  %v1477_v46 = vmul.f32 32.0, %v2265_v45 }
 0x2b3   :  { %2083 = vmatmul.msk.bf16.vlgmr.msra.gmra.mxu0 %vm880_vm1, %v1290_v47  ;;  %v1478_v47 = vsub.f32 1.0, %v1477_v46 }
 0x2b5   :  { %v1479_v48 = vmul.f32 %v2265_v45, %v1478_v47 }
 0x2b7   :  { %v1480_v49 = vadd.f32 %v2265_v45, %v1479_v48 }
 0x2b8   :  { %v1155_v54 = vpop.f32.mrf.mxu0 }
 0x2b9   :  { %v2733_v50 = vsel %vm1481_vm3, %v2265_v45, %v1480_v49 }
 0x2c2   :  { %v1191_v55 = vpop.f32.mrf.mxu2 }
 0x2c3   :  { %v1292_v56 = vpack.c.bf16 %v1191_v55, %v1191_v55 }
 0x2c4   :  { %v1172_v57 = vpop.f32.mrf.mxu1 }
 0x2c5   :  { %v1291_v58 = vpack.c.bf16 %v1172_v57, %v1172_v57  ;;  %2085 = vmatmul.msk.bf16.vlgmr.msra.gmra.mxu2 %vm880_vm1, %v1292_v56 }
 0x2c7   :  { %2084 = vmatmul.msk.bf16.vlgmr.msra.gmra.mxu1 %vm880_vm1, %v1291_v58 }
 0x2ca   :  { %v1193_v59 = vpop.f32.mrf.mxu2 }
 0x2cb   :  { %v1210_v60 = vpop.f32.mrf.mxu3 }
 0x2cc   :  { %v1293_v61 = vpack.c.bf16 %v1210_v60, %v1210_v60  ;;  %v1174_v62 = vpop.f32.mrf.mxu1 }
 0x2cd   :  { %v1229_v63 = vpop.f32.mrf.mxu0  ;;  %v2191_v62 = vld [vmem:[%s2806_s6] sm:$0xff] }
 0x2ce   :  { %v1294_v0 = vpack.c.bf16 %v1229_v63, %v1229_v63  ;;  %2086 = vmatmul.msk.bf16.vlgmr.msra.gmra.mxu3 %vm880_vm1, %v1293_v61  ;;  %v2192_v61 = vld [vmem:[%s2806_s6 + $0x8] sm:$0xff]  ;;  %v2194_v63 = vld [vmem:[%s2806_s6 + $0x18] sm:$0xff] }
 0x2cf   :  { %1562 = vmatpush.bf16.msra.mxu0 %v2192_v61  ;;  %1590 = vmatpush.bf16.msra.mxu1 %v2194_v63 }
 0x2d0   :  { %2087 = vmatmul.msk.bf16.vlgmr.msrb.gmra.mxu0 %vm880_vm1, %v1294_v0 }
 0x2d2   :  { %v1267_v1 = vpop.f32.mrf.mxu2 }
 0x2d3   :  { %v1212_v2 = vpop.f32.mrf.mxu3  ;;  %v1296_v3 = vpack.c.bf16 %v1267_v1, %v1267_v1  ;;  %1563 = vmatpush.bf16.msra.mxu0 %v2191_v62 }
 0x2d5   :  { %v1231_v8 = vpop.f32.mrf.mxu0  ;;  %v1248_v9 = vpop.f32.mrf.mxu1  ;;  %2089 = vmatmul.msk.bf16.vlgmr.msrb.gmra.mxu2 %vm880_vm1, %v1296_v3  ;;  %v2193_v3 = vld [vmem:[%s2806_s6 + $0x10] sm:$0xff] }
 0x2d6   :  { %v1295_v10 = vpack.c.bf16 %v1248_v9, %v1248_v9  ;;  %1591 = vmatpush.bf16.msra.mxu1 %v2193_v3  ;;  %v2198_v8 = vld [vmem:[%s2807_s7 + $0x18] sm:$0xff] }
 0x2d7   :  { %1650 = vmatpush.bf16.msra.mxu2 %v2198_v8 }
 0x2d8   :  { %2088 = vmatmul.msk.bf16.vlgmr.msrb.gmra.mxu1 %vm880_vm1, %v1295_v10 }
 0x2da   :  { %v1269_v11 = vpop.f32.mrf.mxu2 }
 0x2db   :  { %v1286_v12 = vpop.f32.mrf.mxu3  ;;  %v2197_v11 = vld [vmem:[%s2807_s7 + $0x10] sm:$0xff] }
 0x2dc   :  { %v1297_v13 = vpack.c.bf16 %v1286_v12, %v1286_v12  ;;  %1651 = vmatpush.bf16.msra.mxu2 %v2197_v11 }
 0x2dd   :  { %v1250_v14 = vpop.f32.mrf.mxu1 }
 0x2de   :  { %2090 = vmatmul.msk.bf16.vlgmr.msrb.gmra.mxu3 %vm880_vm1, %v1297_v13 }
 0x2e3   :  { %v1288_v15 = vpop.f32.mrf.mxu3 }
 0x330   :  { %v1321_v4 = vpop.f32.mrf.mxu0 }
 0x338   :  { %v1323_v5 = vpop.f32.mrf.mxu0 }
 0x344   :  { %v1340_v16 = vpop.f32.mrf.mxu1 }
 0x348   :  { %v1359_v17 = vpop.f32.mrf.mxu2 }
 0x349   :  { %v1458_v22 = vadd.f32 %v1359_v17, %v1321_v4 }
 0x34c   :  { %v1342_v18 = vpop.f32.mrf.mxu1 }
 0x34d   :  { %v1397_v19 = vpop.f32.mrf.mxu0  ;;  %v1521_v18 = vperm.slane %v2722_v23, 0 }
 0x34e   :  { %v1460_v24 = vadd.f32 %v1458_v22, %v1397_v19 }
 0x350   :  { %v1361_v20 = vpop.f32.mrf.mxu2 }
 0x351   :  { %v1378_v21 = vpop.f32.mrf.mxu3 }
 0x352   :  { %v1459_v33 = vadd.f32 %v1378_v21, %v1340_v16  ;;  %v1524_v21 = vperm.slane %v2722_v23, 1 }
 0x355   :  { %v1399_v6 = vpop.f32.mrf.mxu0  ;;  %v1416_v7 = vpop.f32.mrf.mxu1 }
 0x356   :  { %v1461_v35 = vadd.f32 %v1459_v33, %v1416_v7 }
 0x358   :  { %v1435_v25 = vpop.f32.mrf.mxu2 }
 0x359   :  { %v1380_v26 = vpop.f32.mrf.mxu3  ;;  %v1462_v27 = vadd.f32 %v1460_v24, %v1435_v25 }
 0x35b   :  { %v1465_v30 = vadd.f32 %v2274_v29, %v1462_v27 }
 0x35d   :  { %v1418_v31 = vpop.f32.mrf.mxu1  ;;  %v1468_v32 = vadd.f32 %v1467_v28, %v1465_v30 }
 0x35f   :  { %v1470_v34 = vsel %vm209_vm0, %v1468_v32, 0.0 }
 0x360   :  { %v1437_v36 = vpop.f32.mrf.mxu2  ;;  %1471 = vadd.xlane.f32.xlu1 %v1470_v34  ;;  %v2196_v34 = vld [vmem:[%s2807_s7 + $0x8] sm:$0xff] }
 0x361   :  { %v1454_v37 = vpop.f32.mrf.mxu3  ;;  %1652 = vmatpush.bf16.msra.mxu2 %v2196_v34  ;;  %v2195_v36 = vld [vmem:[%s2807_s7] sm:$0xff] }
 0x362   :  { %v1463_v38 = vadd.f32 %v1461_v35, %v1454_v37  ;;  %v2202_v35 = vld [vmem:[%s2807_s7 + $0x38] sm:$0xff]  ;;  %v2201_v37 = vld [vmem:[%s2807_s7 + $0x30] sm:$0xff] }
 0x363   :  { %1690 = vmatpush.bf16.msra.mxu3 %v2202_v35 }
 0x364   :  { %v1466_v40 = vadd.f32 %v2275_v39, %v1463_v38  ;;  %v2200_v38 = vld [vmem:[%s2807_s7 + $0x28] sm:$0xff]  ;;  %v2199_v39 = vld [vmem:[%s2807_s7 + $0x20] sm:$0xff]  ;;  %s2303_s7 = smov [#allocation2]  }
 0x365   :  { %1653 = vmatpush.bf16.msra.mxu2 %v2195_v36 }
 0x366   :  { %v1469_v41 = vadd.f32 %v1467_v28, %v1466_v40  ;;  %v2231_v40 = vld [vmem:[%s2808_s8] ss:$0 sm:$0xff]  ;;  %s1757_s8 = sshll.u32 %s2303_s7, 4  ;;  %s1758_s8 = int_to_ptr.vmem [resolvable:$true] %s1757_s8 }
 0x367   :  { %1691 = vmatpush.bf16.msra.mxu3 %v2201_v37 }
 0x368   :  { %v1473_v42 = vsel %vm209_vm0, %v1469_v41, 0.0 }
 0x369   :  { %v1456_v43 = vpop.f32.mrf.mxu3  ;;  %1474 = vadd.xlane.f32.xlu2 %v1473_v42 }
 0x36b   :  { %1692 = vmatpush.bf16.msra.mxu3 %v2200_v38 }
 0x36f   :  { %1693 = vmatpush.bf16.msra.mxu3 %v2199_v39 }
 0x3d3   :  { %v1472_v51 = vpop.xlane.xlu1 %1471 }
 0x3d4   :  { %v1483_v52 = vmul.f32 %v2733_v50, %v1472_v51 }
 0x3d6   :  { %v1485_v53 = vsub.f32 %v1468_v32, %v1483_v52  ;;  %v1617_v52 = vperm.slane %v2722_v23, 5 }
 0x3d8   :  { %v1487_v54 = vmul.f32 %v1485_v53, %v1485_v53 }
 0x3da   :  { %v1489_v55 = vsel %vm209_vm0, %v1487_v54, 0.0 }
 0x3db   :  { %1490 = vadd.xlane.f32.xlu0 %v1489_v55 }
 0x3dc   :  { %v1475_v56 = vpop.xlane.xlu2 %1474 }
 0x3dd   :  { %v1484_v57 = vmul.f32 %v2733_v50, %v1475_v56 }
 0x3df   :  { %v1486_v58 = vsub.f32 %v1469_v41, %v1484_v57 }
 0x3e1   :  { %v1488_v59 = vmul.f32 %v1486_v58, %v1486_v58 }
 0x3e3   :  { %v1492_v60 = vsel %vm209_vm0, %v1488_v59, 0.0 }
 0x3e4   :  { %1493 = vadd.xlane.f32.xlu1 %v1492_v60 }
 0x44e   :  { %v1491_v0 = vpop.xlane.xlu0 %1490 }
 0x44f   :  { %v1495_v1 = vmul.f32 %v1491_v0, %v2733_v50 }
 0x451   :  { %v1497_v2 = vadd.f32 1e-05, %v1495_v1 }
 0x453   :  { %2266 = vrsqrt.f32 %v1497_v2  ;;  %vm1505_vm5 = vweird.f32 %v1497_v2 }
 0x457   :  { %v1494_v9 = vpop.xlane.xlu1 %1493 }
 0x458   :  { %v1496_v10 = vmul.f32 %v1494_v9, %v2733_v50 }
 0x459   :  { %v2267_v12 = vpop.eup %2266 }
 0x45a   :  { %v1500_v13 = vmul.f32 %v2267_v12, %v1497_v2  ;;  %v1498_v14 = vadd.f32 1e-05, %v1496_v10  ;;  %vm1506_vm4 = vweird.f32 %v2267_v12 }
 0x45b   :  { %vm1507_vm6 = vmor %vm1505_vm5, %vm1506_vm4 }
 0x45c   :  { %v1501_v15 = vmul.f32 %v2267_v12, %v1500_v13  ;;  %2268 = vrsqrt.f32 %v1498_v14  ;;  %vm1515_vm8 = vweird.f32 %v1498_v14 }
 0x45e   :  { %v1502_v4 = vmul.f32 0.5, %v1501_v15 }
 0x460   :  { %v1503_v5 = vsub.f32 1.5, %v1502_v4 }
 0x462   :  { %v2269_v16 = vpop.eup %2268  ;;  %v1504_v17 = vmul.f32 %v2267_v12, %v1503_v5 }
 0x463   :  { %v1510_v19 = vmul.f32 %v2269_v16, %v1498_v14  ;;  %vm1516_vm7 = vweird.f32 %v2269_v16 }
 0x464   :  { %v1508_v20 = vsel %vm1507_vm6, %v2267_v12, %v1504_v17  ;;  %vm1517_vm9 = vmor %vm1515_vm8, %vm1516_vm7 }
 0x465   :  { %v1519_v22 = vmul.f32 %v1508_v20, %v1485_v53  ;;  %v1511_v6 = vmul.f32 %v2269_v16, %v1510_v19 }
 0x467   :  { %v1522_v7 = vmul.f32 %v1521_v18, %v1519_v22  ;;  %v1512_v24 = vmul.f32 0.5, %v1511_v6 }
 0x469   :  { %v1525_v25 = vadd.f32 %v1524_v21, %v1522_v7  ;;  %v1513_v26 = vsub.f32 1.5, %v1512_v24  ;;  %v1745_v7 = vperm.slane %v2722_v23, 2 }
 0x46b   :  { %v1527_v27 = vpack.c.bf16 %v1525_v25, %v1525_v25  ;;  %v1514_v28 = vmul.f32 %v2269_v16, %v1513_v26 }
 0x46d   :  { %v1518_v29 = vsel %vm1517_vm9, %v2269_v16, %v1514_v28  ;;  %2099 = vmatmul.msk.bf16.vlgmr.msra.gmra.mxu0 %vm209_vm0, %v1527_v27 }
 0x46e   :  { %v1520_v30 = vmul.f32 %v1518_v29, %v1486_v58 }
 0x470   :  { %v1523_v31 = vmul.f32 %v1521_v18, %v1520_v30 }
 0x472   :  { %v1526_v32 = vadd.f32 %v1524_v21, %v1523_v31 }
 0x474   :  { %v1528_v33 = vpack.c.bf16 %v1526_v32, %v1526_v32 }
 0x476   :  { %2108 = vmatmul.msk.bf16.vlgmr.msra.gmra.mxu1 %vm209_vm0, %v1528_v33 }
 0x4ea   :  { %v1565_v41 = vpop.f32.mrf.mxu0 }
 0x4eb   :  { %v1566_v42 = vadd.f32 %v2231_v40, %v1565_v41 }
 0x4ed   :  { %v1597_v43 = vmax.f32 %v1566_v42, 0.0 }
 0x4ef   :  { %v1599_v44 = vpack.c.bf16 %v1597_v43, %v1597_v43 }
 0x4f1   :  { %2125 = vmatmul.msk.bf16.vlgmr.msra.gmra.mxu2 %vm1642_vm10, %v1599_v44 }
 0x4f2   :  { %v1567_v45 = vpop.f32.mrf.mxu0 }
 0x4f3   :  { %v1593_v46 = vpop.f32.mrf.mxu1 }
 0x4f4   :  { %v1594_v47 = vadd.f32 %v2231_v40, %v1593_v46 }
 0x4f6   :  { %v1598_v48 = vmax.f32 %v1594_v47, 0.0 }
 0x4f8   :  { %v1600_v49 = vpack.c.bf16 %v1598_v48, %v1598_v48 }
 0x4fa   :  { %2142 = vmatmul.msk.bf16.vlgmr.msra.gmra.mxu3 %vm1642_vm10, %v1600_v49 }
 0x4fb   :  { %v1595_v51 = vpop.f32.mrf.mxu1 }
 0x574   :  { %v1655_v53 = vpop.f32.mrf.mxu2 }
 0x575   :  { %v1656_v54 = vadd.f32 %v1655_v53, %v1617_v52 }
 0x577   :  { %v1699_v55 = vadd.f32 %v1656_v54, %v1525_v25 }
 0x579   :  { %v1701_v56 = vsel %vm209_vm0, %v1699_v55, 0.0 }
 0x57a   :  { %1702 = vadd.xlane.f32.xlu2 %v1701_v56 }
 0x57c   :  { %v1657_v57 = vpop.f32.mrf.mxu2 }
 0x57d   :  { %v1695_v58 = vpop.f32.mrf.mxu3 }
 0x57e   :  { %v1696_v59 = vadd.f32 %v1695_v58, %v1617_v52 }
 0x580   :  { %v1700_v60 = vadd.f32 %v1696_v59, %v1526_v32 }
 0x582   :  { %v1704_v61 = vsel %vm209_vm0, %v1700_v60, 0.0 }
 0x583   :  { %1705 = vadd.xlane.f32.xlu0 %v1704_v61 }
 0x585   :  { %v1697_v62 = vpop.f32.mrf.mxu3 }
 0x5ed   :  { %v1703_v63 = vpop.xlane.xlu2 %1702 }
 0x5ee   :  { %v1707_v0 = vmul.f32 %v1703_v63, %v2733_v50 }
 0x5f0   :  { %v1709_v1 = vsub.f32 %v1699_v55, %v1707_v0 }
 0x5f2   :  { %v1711_v2 = vmul.f32 %v1709_v1, %v1709_v1 }
 0x5f4   :  { %v1713_v3 = vsel %vm209_vm0, %v1711_v2, 0.0 }
 0x5f5   :  { %1714 = vadd.xlane.f32.xlu1 %v1713_v3 }
 0x5f6   :  { %v1706_v8 = vpop.xlane.xlu0 %1705 }
 0x5f7   :  { %v1708_v9 = vmul.f32 %v1706_v8, %v2733_v50 }
 0x5f9   :  { %v1710_v10 = vsub.f32 %v1700_v60, %v1708_v9 }
 0x5fb   :  { %v1712_v11 = vmul.f32 %v1710_v10, %v1710_v10 }
 0x5fd   :  { %v1716_v12 = vsel %vm209_vm0, %v1712_v11, 0.0 }
 0x5fe   :  { %1717 = vadd.xlane.f32.xlu2 %v1716_v12 }
 0x668   :  { %v1715_v13 = vpop.xlane.xlu1 %1714 }
 0x669   :  { %v1719_v14 = vmul.f32 %v1715_v13, %v2733_v50 }
 0x66b   :  { %v1721_v15 = vadd.f32 1e-05, %v1719_v14 }
 0x66d   :  { %2270 = vrsqrt.f32 %v1721_v15  ;;  %vm1729_vm12 = vweird.f32 %v1721_v15 }
 0x671   :  { %v1718_v4 = vpop.xlane.xlu2 %1717 }
 0x672   :  { %v1720_v5 = vmul.f32 %v1718_v4, %v2733_v50  ;;  %v1748_v50 = vperm.slane %v2722_v23, 3 }
 0x673   :  { %v2271_v16 = vpop.eup %2270 }
 0x674   :  { %v1724_v17 = vmul.f32 %v2271_v16, %v1721_v15  ;;  %v1722_v18 = vadd.f32 1e-05, %v1720_v5  ;;  %vm1730_vm11 = vweird.f32 %v2271_v16 }
 0x675   :  { %vm1731_vm13 = vmor %vm1729_vm12, %vm1730_vm11 }
 0x676   :  { %v1725_v19 = vmul.f32 %v2271_v16, %v1724_v17  ;;  %2272 = vrsqrt.f32 %v1722_v18  ;;  %vm1739_vm15 = vweird.f32 %v1722_v18 }
 0x678   :  { %v1726_v20 = vmul.f32 0.5, %v1725_v19 }
 0x67a   :  { %v1727_v21 = vsub.f32 1.5, %v1726_v20 }
 0x67c   :  { %v2273_v22 = vpop.eup %2272  ;;  %v1728_v6 = vmul.f32 %v2271_v16, %v1727_v21 }
 0x67d   :  { %v1734_v24 = vmul.f32 %v2273_v22, %v1722_v18  ;;  %vm1740_vm14 = vweird.f32 %v2273_v22 }
 0x67e   :  { %v1732_v25 = vsel %vm1731_vm13, %v2271_v16, %v1728_v6  ;;  %vm1741_vm1 = vmor %vm1739_vm15, %vm1740_vm14 }
 0x67f   :  { %v1743_v26 = vmul.f32 %v1732_v25, %v1709_v1  ;;  %v1735_v27 = vmul.f32 %v2273_v22, %v1734_v24 }
 0x681   :  { %v1746_v28 = vmul.f32 %v1745_v7, %v1743_v26  ;;  %v1736_v29 = vmul.f32 0.5, %v1735_v27 }
 0x683   :  { %v1737_v30 = vsub.f32 1.5, %v1736_v29  ;;  %v1749_v31 = vadd.f32 %v1748_v50, %v1746_v28 }
 0x685   :  { %v1738_v32 = vmul.f32 %v2273_v22, %v1737_v30  ;;  %1751 = vst.msk [vmem:[#allocation2] sm:$0xff] %vm209_vm0, %v1749_v31 }
 0x687   :  { %v1742_v33 = vsel %vm1741_vm1, %v2273_v22, %v1738_v32 }
 0x688   :  { %v1744_v34 = vmul.f32 %v1742_v33, %v1710_v10 }
 0x68a   :  { %v1747_v35 = vmul.f32 %v1745_v7, %v1744_v34 }
 0x68c   :  { %v1750_v23 = vadd.f32 %v1748_v50, %v1747_v35 }
 0x68e   :  { %1752 = vst.msk [vmem:[#allocation2 + $0x8] sm:$0xff] %vm209_vm0, %v1750_v23 }
 0x68f   :  { %1765 = dma.vmem_to_hbm [thread:$0]  %s1758_s8, 256, %s1760_s0, [#allocation3], %s2304_s16, %s2304_s16, %s2305_s17  }
 0x690   :  { %2300 = dma.done.wait [#allocation3], 256  }
 0x691   :  { %2301 = vsyncadd [#allocation3], 4294967040 }
 0x692   :  { %1770 = vsyncpa [#allocation3], 1 }

</bundles_post_ra>
